<compile_context>
chip_gen: v6e
topology: v6e:2x2x1
jax: 0.10.0
libtpu: 0.0.40
codegen_flags: <defaults>
</compile_context>

<pallas_src>
import math

import jax
import jax.numpy as jnp
from jax.experimental import pallas as pl
from jax.experimental.pallas import tpu as pltpu


# ---------------------------------------------------------------------------
# Model hyper-parameters (small, consistent with the module's forward)
# ---------------------------------------------------------------------------
BATCH = 2
SEQ = 8
EMBED = 128          # embed_dims
NUM_HEADS = 4
HEAD_DIM = EMBED // NUM_HEADS
FFN_HIDDEN = 4 * EMBED
# TODO(synk): PFFN's internal hidden width is not visible in the snippet; 4*embed_dims assumed.
LN_EPS = 1e-5


# ---------------------------------------------------------------------------
# In-kernel helpers
# ---------------------------------------------------------------------------
def _layer_norm(y, gamma, beta):
    mu = jnp.mean(y, axis=-1, keepdims=True)
    var = jnp.mean((y - mu) * (y - mu), axis=-1, keepdims=True)
    return (y - mu) * jax.lax.rsqrt(var + LN_EPS) * gamma + beta


# ---------------------------------------------------------------------------
# Pallas kernel: full encoder block for the whole (B, S, E) slab in one step
# ---------------------------------------------------------------------------
def encoder_kernel(
    x_ref,                                     # (B, S, E)   bf16
    wqkv_ref, bqkv_ref,                        # (E, 3E) bf16, (1, 3E) f32  (scale folded into Wq/bq)
    wo_ref, bo_ref,                            # (E, E) bf16, (1, E) f32
    g1_ref, beta1_ref,                         # (1, E) f32   LayerNorm 1
    w1_ref, b1_ref,                            # (E, F) bf16, (1, F) f32
    w2_ref, b2_ref,                            # (F, E) bf16, (1, E) f32
    g2_ref, beta2_ref,                         # (1, E) f32   LayerNorm 2
    out_ref,                                   # (B, S, E)   f32
):
    B, S, E = x_ref.shape
    H, DH = NUM_HEADS, HEAD_DIM

    x_bf = x_ref[...].reshape(B * S, E)                              # bf16 slab (B*S, E)
    x = x_bf.astype(jnp.float32)                                     # f32 copy for residual / LN

    # ---------------- Fused QKV projection (one MXU pass, N = 3E) ----------------
    qkv = jnp.dot(x_bf, wqkv_ref[...],
                  preferred_element_type=jnp.float32) + bqkv_ref[...]   # (B*S, 3E) f32
    q = qkv[:, :E]              # 1/sqrt(dh) already folded into Wq/bq (128-lane boundaries)
    k = qkv[:, E:2 * E]
    v = qkv[:, 2 * E:]

    # ---------------- Attention: all batches & heads in one batched einsum -------
    def to_heads(t):            # (B*S, E) -> (B*H, S, dh)
        t4 = t.reshape(B, S, H, DH)
        return jnp.transpose(t4, (0, 2, 1, 3)).reshape(B * H, S, DH)

    qh = to_heads(q).astype(jnp.bfloat16)
    kh = to_heads(k).astype(jnp.bfloat16)
    vh = to_heads(v).astype(jnp.bfloat16)

    s = jnp.einsum("hqd,hkd->hqk", qh, kh,
                   preferred_element_type=jnp.float32)               # (B*H, S, S)
    s = s - jnp.max(s, axis=-1, keepdims=True)                       # stabilized softmax
    p = jnp.exp(s)
    p = p * pl.reciprocal(jnp.sum(p, axis=-1, keepdims=True), approx=True)
    o = jnp.einsum("hqk,hkd->hqd", p.astype(jnp.bfloat16), vh,
                   preferred_element_type=jnp.float32)               # (B*H, S, dh)

    # merge heads: (B*H, S, dh) -> (B*S, E)
    o = jnp.transpose(o.reshape(B, H, S, DH), (0, 2, 1, 3)).reshape(B * S, E)

    attn = jnp.dot(o.astype(jnp.bfloat16), wo_ref[...],
                   preferred_element_type=jnp.float32) + bo_ref[...]
    # dropout1 -> identity (eval mode)

    # ---------------- AddNorm 1 ----------------
    x1 = _layer_norm(x + attn, g1_ref[...], beta1_ref[...])          # (B*S, E) f32

    # ---------------- Position-wise FFN ----------------
    h1 = jnp.dot(x1.astype(jnp.bfloat16), w1_ref[...],
                 preferred_element_type=jnp.float32) + b1_ref[...]
    h1 = jnp.maximum(h1, 0.0)                                        # ReLU
    ffn = jnp.dot(h1.astype(jnp.bfloat16), w2_ref[...],
                  preferred_element_type=jnp.float32) + b2_ref[...]
    # dropout2 -> identity (eval mode)

    # ---------------- AddNorm 2 ----------------
    out = _layer_norm(x1 + ffn, g2_ref[...], beta2_ref[...])

    out_ref[...] = out.reshape(B, S, E).astype(out_ref.dtype)


# ---------------------------------------------------------------------------
# Parameter packing (done ONCE, outside the jitted per-call hot path)
# ---------------------------------------------------------------------------
def pack_params(params):
    """Fuse Q/K/V, fold the 1/sqrt(dh) attention scale into Wq/bq, cast weights to bf16."""
    scale = 1.0 / math.sqrt(HEAD_DIM)
    wqkv = jnp.concatenate(
        [params["wq"] * scale, params["wk"], params["wv"]], axis=1)      # (E, 3E)
    bqkv = jnp.concatenate(
        [params["bq"] * scale, params["bk"], params["bv"]], axis=1)      # (1, 3E)
    return {
        "wqkv": wqkv.astype(jnp.bfloat16),
        "bqkv": bqkv.astype(jnp.float32),
        "wo": params["wo"].astype(jnp.bfloat16),
        "bo": params["bo"].astype(jnp.float32),
        "g1": params["g1"].astype(jnp.float32),
        "beta1": params["beta1"].astype(jnp.float32),
        "w1": params["w1"].astype(jnp.bfloat16),
        "b1": params["b1"].astype(jnp.float32),
        "w2": params["w2"].astype(jnp.bfloat16),
        "b2": params["b2"].astype(jnp.float32),
        "g2": params["g2"].astype(jnp.float32),
        "beta2": params["beta2"].astype(jnp.float32),
    }


# ---------------------------------------------------------------------------
# Wrapper
# ---------------------------------------------------------------------------
def _full_spec(shape):
    nd = len(shape)
    return pl.BlockSpec(shape, lambda i, _nd=nd: (0,) * _nd)


@jax.jit
def encoder_forward(x, packed):
    B, S, E = x.shape
    F = packed["w1"].shape[1]

    weight_args = [
        packed["wqkv"], packed["bqkv"],
        packed["wo"], packed["bo"],
        packed["g1"], packed["beta1"],
        packed["w1"], packed["b1"],
        packed["w2"], packed["b2"],
        packed["g2"], packed["beta2"],
    ]

    # Cast the (tiny) activation slab to bf16 once at kernel entry.
    x_bf = x.astype(jnp.bfloat16)

    in_specs = [pl.BlockSpec((B, S, E), lambda i: (0, 0, 0))]
    in_specs += [_full_spec(a.shape) for a in weight_args]

    flops = (
        2 * B * S * E * (3 * E)                        # fused QKV projection
        + 4 * B * NUM_HEADS * S * S * HEAD_DIM         # scores + p@v
        + 2 * B * S * E * E                            # output projection
        + 4 * B * S * E * F                            # FFN up + down
    )
    transcendentals = B * NUM_HEADS * S * S            # softmax exp
    bytes_accessed = (
        int(x_bf.size) * 2 + int(x.size) * x.dtype.itemsize
        + sum(int(a.size) * a.dtype.itemsize for a in weight_args)
    )

    return pl.pallas_call(
        encoder_kernel,
        out_shape=jax.ShapeDtypeStruct((B, S, E), x.dtype),
        grid_spec=pltpu.PrefetchScalarGridSpec(
            num_scalar_prefetch=0,
            grid=(1,),                                  # whole problem in one step:
            in_specs=in_specs,                          # weight DMA + launch overhead paid once
            out_specs=pl.BlockSpec((B, S, E), lambda i: (0, 0, 0)),
        ),
        compiler_params=pltpu.CompilerParams(
            dimension_semantics=("arbitrary",),
        ),
        cost_estimate=pl.CostEstimate(
            flops=flops,
            transcendentals=transcendentals,
            bytes_accessed=bytes_accessed,
        ),
    )(x_bf, *weight_args)


# ---------------------------------------------------------------------------
# Pure-JAX f32 reference (numerical sanity check)
# ---------------------------------------------------------------------------
def encoder_reference(x, p):
    def ln(y, g, b):
        mu = jnp.mean(y, axis=-1, keepdims=True)
        var = jnp.mean((y - mu) ** 2, axis=-1, keepdims=True)
        return (y - mu) / jnp.sqrt(var + LN_EPS) * g + b

    B, S, E = x.shape
    q = x @ p["wq"] + p["bq"]
    k = x @ p["wk"] + p["bk"]
    v = x @ p["wv"] + p["bv"]

    def split_heads(t):
        return t.reshape(B, S, NUM_HEADS, HEAD_DIM).transpose(0, 2, 1, 3)

    qh, kh, vh = split_heads(q), split_heads(k), split_heads(v)
    scores = jnp.einsum("bhqd,bhkd->bhqk", qh, kh) / math.sqrt(HEAD_DIM)
    probs = jax.nn.softmax(scores, axis=-1)
    attn = jnp.einsum("bhqk,bhkd->bhqd", probs, vh)
    attn = attn.transpose(0, 2, 1, 3).reshape(B, S, E)
    attn = attn @ p["wo"] + p["bo"]

    x1 = ln(x + attn, p["g1"], p["beta1"])
    ffn = jnp.maximum(x1 @ p["w1"] + p["b1"], 0.0) @ p["w2"] + p["b2"]
    return ln(x1 + ffn, p["g2"], p["beta2"])


# ---------------------------------------------------------------------------
# Deterministic parameter init
# ---------------------------------------------------------------------------
def init_params(key):
    keys = jax.random.split(key, 12)

    def lin(k, fan_in, fan_out):
        bound = 1.0 / math.sqrt(fan_in)
        return jax.random.uniform(
            k, (fan_in, fan_out), jnp.float32, minval=-bound, maxval=bound
        )

    def bias(k, fan_in, n):
        bound = 1.0 / math.sqrt(fan_in)
        return jax.random.uniform(k, (1, n), jnp.float32, minval=-bound, maxval=bound)

    E, F = EMBED, FFN_HIDDEN
    return {
        "wq": lin(keys[0], E, E), "bq": bias(keys[1], E, E),
        "wk": lin(keys[2], E, E), "bk": bias(keys[3], E, E),
        "wv": lin(keys[4], E, E), "bv": bias(keys[5], E, E),
        "wo": lin(keys[6], E, E), "bo": bias(keys[7], E, E),
        "g1": jnp.ones((1, E), jnp.float32), "beta1": jnp.zeros((1, E), jnp.float32),
        "w1": lin(keys[8], E, F), "b1": bias(keys[9], E, F),
        "w2": lin(keys[10], F, E), "b2": bias(keys[11], F, E),
        "g2": jnp.ones((1, E), jnp.float32), "beta2": jnp.zeros((1, E), jnp.float32),
    }


if __name__ == "__main__":
    key = jax.random.PRNGKey(0)
    k_x, k_p = jax.random.split(key)
    x = jax.random.normal(k_x, (BATCH, SEQ, EMBED), jnp.float32)
    params = init_params(k_p)

    packed = pack_params(params)            # one-time packing (not in the per-call hot path)

    out = jax.block_until_ready(encoder_forward(x, packed))

    ref = encoder_reference(x, params)      # exact f32 reference
    assert out.shape == (BATCH, SEQ, EMBED)
    # Tolerance covers bf16 weight/activation quantization (kernel accumulates in f32).
    assert jnp.allclose(out, ref, atol=3e-2, rtol=3e-2), "Pallas kernel mismatch vs reference"

    print("KERNEL_OK")
</pallas_src>

<mosaic_0001>
module attributes {stable_mosaic.version = 11 : i64} {
  func.func @encoder_kernel(%arg0: i32, %arg1: memref<2x8x128xbf16, #tpu.memory_space<vmem>>, %arg2: memref<128x384xbf16, #tpu.memory_space<vmem>>, %arg3: memref<1x384xf32, #tpu.memory_space<vmem>>, %arg4: memref<128x128xbf16, #tpu.memory_space<vmem>>, %arg5: memref<1x128xf32, #tpu.memory_space<vmem>>, %arg6: memref<1x128xf32, #tpu.memory_space<vmem>>, %arg7: memref<1x128xf32, #tpu.memory_space<vmem>>, %arg8: memref<128x512xbf16, #tpu.memory_space<vmem>>, %arg9: memref<1x512xf32, #tpu.memory_space<vmem>>, %arg10: memref<512x128xbf16, #tpu.memory_space<vmem>>, %arg11: memref<1x128xf32, #tpu.memory_space<vmem>>, %arg12: memref<1x128xf32, #tpu.memory_space<vmem>>, %arg13: memref<1x128xf32, #tpu.memory_space<vmem>>, %arg14: memref<2x8x128xf32, #tpu.memory_space<vmem>>) attributes {dimension_semantics = [#tpu.dimension_semantics<arbitrary>], iteration_bounds = array<i64: 1>, scalar_prefetch = 0 : i64, scratch_operands = 0 : i64, tpu.core_type = #tpu.core_type<tc>, window_params = [{pipeline_mode = #tpu.pipeline_mode<synchronous>, transform_indices = @transform_0, window_bounds = array<i64: 2, 8, 128>}, {pipeline_mode = #tpu.pipeline_mode<synchronous>, transform_indices = @transform_1, window_bounds = array<i64: 128, 384>}, {pipeline_mode = #tpu.pipeline_mode<synchronous>, transform_indices = @transform_2, window_bounds = array<i64: 1, 384>}, {pipeline_mode = #tpu.pipeline_mode<synchronous>, transform_indices = @transform_3, window_bounds = array<i64: 128, 128>}, {pipeline_mode = #tpu.pipeline_mode<synchronous>, transform_indices = @transform_4, window_bounds = array<i64: 1, 128>}, {pipeline_mode = #tpu.pipeline_mode<synchronous>, transform_indices = @transform_5, window_bounds = array<i64: 1, 128>}, {pipeline_mode = #tpu.pipeline_mode<synchronous>, transform_indices = @transform_6, window_bounds = array<i64: 1, 128>}, {pipeline_mode = #tpu.pipeline_mode<synchronous>, transform_indices = @transform_7, window_bounds = array<i64: 128, 512>}, {pipeline_mode = #tpu.pipeline_mode<synchronous>, transform_indices = @transform_8, window_bounds = array<i64: 1, 512>}, {pipeline_mode = #tpu.pipeline_mode<synchronous>, transform_indices = @transform_9, window_bounds = array<i64: 512, 128>}, {pipeline_mode = #tpu.pipeline_mode<synchronous>, transform_indices = @transform_10, window_bounds = array<i64: 1, 128>}, {pipeline_mode = #tpu.pipeline_mode<synchronous>, transform_indices = @transform_11, window_bounds = array<i64: 1, 128>}, {pipeline_mode = #tpu.pipeline_mode<synchronous>, transform_indices = @transform_12, window_bounds = array<i64: 1, 128>}, {pipeline_mode = #tpu.pipeline_mode<synchronous>, transform_indices = @transform_13, window_bounds = array<i64: 2, 8, 128>}]} {
    %c0 = arith.constant 0 : index
    %c0_0 = arith.constant 0 : index
    %c0_1 = arith.constant 0 : index
    %0 = vector.load %arg1[%c0, %c0_0, %c0_1] : memref<2x8x128xbf16, #tpu.memory_space<vmem>>, vector<2x8x128xbf16>
    %1 = vector.shape_cast %0 : vector<2x8x128xbf16> to vector<16x128xbf16>
    %2 = arith.extf %1 : vector<16x128xbf16> to vector<16x128xf32>
    %c0_2 = arith.constant 0 : index
    %c0_3 = arith.constant 0 : index
    %3 = vector.load %arg2[%c0_2, %c0_3] : memref<128x384xbf16, #tpu.memory_space<vmem>>, vector<128x384xbf16>
    %cst = arith.constant dense<0.000000e+00> : vector<16x384xf32>
    %4 = tpu.matmul %1, %3, %cst {dimension_numbers = #tpu.dot_dimension_numbers<[1], [0], [0], [1], [0, 0, 1, 1], [], []>} : vector<16x128xbf16>, vector<128x384xbf16>, vector<16x384xf32> -> vector<16x384xf32>
    %c0_4 = arith.constant 0 : index
    %c0_5 = arith.constant 0 : index
    %5 = vector.load %arg3[%c0_4, %c0_5] : memref<1x384xf32, #tpu.memory_space<vmem>>, vector<1x384xf32>
    %6 = vector.broadcast %5 : vector<1x384xf32> to vector<16x384xf32>
    %7 = arith.addf %4, %6 : vector<16x384xf32>
    %8 = vector.extract_strided_slice %7 {offsets = [0, 0], sizes = [16, 128], strides = [1, 1]} : vector<16x384xf32> to vector<16x128xf32>
    %9 = vector.extract_strided_slice %7 {offsets = [0, 128], sizes = [16, 128], strides = [1, 1]} : vector<16x384xf32> to vector<16x128xf32>
    %10 = vector.extract_strided_slice %7 {offsets = [0, 256], sizes = [16, 128], strides = [1, 1]} : vector<16x384xf32> to vector<16x128xf32>
    %11 = vector.shape_cast %8 : vector<16x128xf32> to vector<2x8x4x32xf32>
    %12 = tpu.transpose %11, [0, 2, 1, 3] : vector<2x8x4x32xf32> -> vector<2x4x8x32xf32>
    %13 = vector.shape_cast %12 : vector<2x4x8x32xf32> to vector<8x8x32xf32>
    %14 = arith.truncf %13 : vector<8x8x32xf32> to vector<8x8x32xbf16>
    %15 = vector.shape_cast %9 : vector<16x128xf32> to vector<2x8x4x32xf32>
    %16 = tpu.transpose %15, [0, 2, 1, 3] : vector<2x8x4x32xf32> -> vector<2x4x8x32xf32>
    %17 = vector.shape_cast %16 : vector<2x4x8x32xf32> to vector<8x8x32xf32>
    %18 = arith.truncf %17 : vector<8x8x32xf32> to vector<8x8x32xbf16>
    %19 = vector.shape_cast %10 : vector<16x128xf32> to vector<2x8x4x32xf32>
    %20 = tpu.transpose %19, [0, 2, 1, 3] : vector<2x8x4x32xf32> -> vector<2x4x8x32xf32>
    %21 = vector.shape_cast %20 : vector<2x4x8x32xf32> to vector<8x8x32xf32>
    %22 = arith.truncf %21 : vector<8x8x32xf32> to vector<8x8x32xbf16>
    "tpu.trace_start"() <{level = 10 : i32, message = "hqd,hkd->hqk"}> : () -> ()
    %cst_6 = arith.constant dense<0.000000e+00> : vector<8x8x8xf32>
    %23 = tpu.matmul %14, %18, %cst_6 {dimension_numbers = #tpu.dot_dimension_numbers<[2], [2], [1], [1], [0, 0, 0, 1, 1, 1], [0], [0]>} : vector<8x8x32xbf16>, vector<8x8x32xbf16>, vector<8x8x8xf32> -> vector<8x8x8xf32>
    "tpu.trace_stop"() : () -> ()
    %cst_7 = arith.constant dense<0xFF800000> : vector<8x8xf32>
    %24 = vector.multi_reduction <maximumf>, %23, %cst_7 [2] : vector<8x8x8xf32> to vector<8x8xf32>
    %25 = vector.shape_cast %24 : vector<8x8xf32> to vector<8x8x1xf32>
    %26 = vector.broadcast %25 : vector<8x8x1xf32> to vector<8x8x8xf32>
    %27 = arith.subf %23, %26 : vector<8x8x8xf32>
    %28 = math.exp %27 : vector<8x8x8xf32>
    %cst_8 = arith.constant dense<0.000000e+00> : vector<8x8xf32>
    %29 = vector.multi_reduction <add>, %28, %cst_8 [2] : vector<8x8x8xf32> to vector<8x8xf32>
    %30 = vector.shape_cast %29 : vector<8x8xf32> to vector<8x8x1xf32>
    %31 = tpu.reciprocal %30 {approx = true} : vector<8x8x1xf32> -> vector<8x8x1xf32>
    %32 = vector.broadcast %31 : vector<8x8x1xf32> to vector<8x8x8xf32>
    %33 = arith.mulf %28, %32 : vector<8x8x8xf32>
    %34 = arith.truncf %33 : vector<8x8x8xf32> to vector<8x8x8xbf16>
    "tpu.trace_start"() <{level = 10 : i32, message = "hqk,hkd->hqd"}> : () -> ()
    %cst_9 = arith.constant dense<0.000000e+00> : vector<8x8x32xf32>
    %35 = tpu.matmul %34, %22, %cst_9 {dimension_numbers = #tpu.dot_dimension_numbers<[2], [1], [1], [2], [0, 0, 0, 1, 1, 2], [0], [0]>} : vector<8x8x8xbf16>, vector<8x8x32xbf16>, vector<8x8x32xf32> -> vector<8x8x32xf32>
    "tpu.trace_stop"() : () -> ()
    %36 = vector.shape_cast %35 : vector<8x8x32xf32> to vector<2x4x8x32xf32>
    %37 = tpu.transpose %36, [0, 2, 1, 3] : vector<2x4x8x32xf32> -> vector<2x8x4x32xf32>
    %38 = vector.shape_cast %37 : vector<2x8x4x32xf32> to vector<16x128xf32>
    %39 = arith.truncf %38 : vector<16x128xf32> to vector<16x128xbf16>
    %c0_10 = arith.constant 0 : index
    %c0_11 = arith.constant 0 : index
    %40 = vector.load %arg4[%c0_10, %c0_11] : memref<128x128xbf16, #tpu.memory_space<vmem>>, vector<128x128xbf16>
    %cst_12 = arith.constant dense<0.000000e+00> : vector<16x128xf32>
    %41 = tpu.matmul %39, %40, %cst_12 {dimension_numbers = #tpu.dot_dimension_numbers<[1], [0], [0], [1], [0, 0, 1, 1], [], []>} : vector<16x128xbf16>, vector<128x128xbf16>, vector<16x128xf32> -> vector<16x128xf32>
    %c0_13 = arith.constant 0 : index
    %c0_14 = arith.constant 0 : index
    %42 = vector.load %arg5[%c0_13, %c0_14] : memref<1x128xf32, #tpu.memory_space<vmem>>, vector<1x128xf32>
    %43 = vector.broadcast %42 : vector<1x128xf32> to vector<16x128xf32>
    %44 = arith.addf %41, %43 : vector<16x128xf32>
    %45 = arith.addf %2, %44 : vector<16x128xf32>
    %c0_15 = arith.constant 0 : index
    %c0_16 = arith.constant 0 : index
    %46 = vector.load %arg6[%c0_15, %c0_16] : memref<1x128xf32, #tpu.memory_space<vmem>>, vector<1x128xf32>
    %c0_17 = arith.constant 0 : index
    %c0_18 = arith.constant 0 : index
    %47 = vector.load %arg7[%c0_17, %c0_18] : memref<1x128xf32, #tpu.memory_space<vmem>>, vector<1x128xf32>
    %cst_19 = arith.constant dense<0.000000e+00> : vector<16xf32>
    %48 = vector.multi_reduction <add>, %45, %cst_19 [1] : vector<16x128xf32> to vector<16xf32>
    %49 = vector.shape_cast %48 : vector<16xf32> to vector<16x1xf32>
    %cst_20 = arith.constant 1.280000e+02 : f32
    %50 = vector.broadcast %cst_20 : f32 to vector<16x1xf32>
    %51 = arith.divf %49, %50 : vector<16x1xf32>
    %52 = vector.broadcast %51 : vector<16x1xf32> to vector<16x128xf32>
    %53 = arith.subf %45, %52 : vector<16x128xf32>
    %54 = vector.broadcast %51 : vector<16x1xf32> to vector<16x128xf32>
    %55 = arith.subf %45, %54 : vector<16x128xf32>
    %56 = arith.mulf %53, %55 : vector<16x128xf32>
    %cst_21 = arith.constant dense<0.000000e+00> : vector<16xf32>
    %57 = vector.multi_reduction <add>, %56, %cst_21 [1] : vector<16x128xf32> to vector<16xf32>
    %58 = vector.shape_cast %57 : vector<16xf32> to vector<16x1xf32>
    %cst_22 = arith.constant 1.280000e+02 : f32
    %59 = vector.broadcast %cst_22 : f32 to vector<16x1xf32>
    %60 = arith.divf %58, %59 : vector<16x1xf32>
    %61 = vector.broadcast %51 : vector<16x1xf32> to vector<16x128xf32>
    %62 = arith.subf %45, %61 : vector<16x128xf32>
    %cst_23 = arith.constant 9.99999974E-6 : f32
    %63 = vector.broadcast %cst_23 : f32 to vector<16x1xf32>
    %64 = arith.addf %60, %63 : vector<16x1xf32>
    %65 = math.rsqrt %64 : vector<16x1xf32>
    %66 = vector.broadcast %65 : vector<16x1xf32> to vector<16x128xf32>
    %67 = arith.mulf %62, %66 : vector<16x128xf32>
    %68 = vector.broadcast %46 : vector<1x128xf32> to vector<16x128xf32>
    %69 = arith.mulf %67, %68 : vector<16x128xf32>
    %70 = vector.broadcast %47 : vector<1x128xf32> to vector<16x128xf32>
    %71 = arith.addf %69, %70 : vector<16x128xf32>
    %72 = arith.truncf %71 : vector<16x128xf32> to vector<16x128xbf16>
    %c0_24 = arith.constant 0 : index
    %c0_25 = arith.constant 0 : index
    %73 = vector.load %arg8[%c0_24, %c0_25] : memref<128x512xbf16, #tpu.memory_space<vmem>>, vector<128x512xbf16>
    %cst_26 = arith.constant dense<0.000000e+00> : vector<16x512xf32>
    %74 = tpu.matmul %72, %73, %cst_26 {dimension_numbers = #tpu.dot_dimension_numbers<[1], [0], [0], [1], [0, 0, 1, 1], [], []>} : vector<16x128xbf16>, vector<128x512xbf16>, vector<16x512xf32> -> vector<16x512xf32>
    %c0_27 = arith.constant 0 : index
    %c0_28 = arith.constant 0 : index
    %75 = vector.load %arg9[%c0_27, %c0_28] : memref<1x512xf32, #tpu.memory_space<vmem>>, vector<1x512xf32>
    %76 = vector.broadcast %75 : vector<1x512xf32> to vector<16x512xf32>
    %77 = arith.addf %74, %76 : vector<16x512xf32>
    %cst_29 = arith.constant 0.000000e+00 : f32
    %78 = vector.broadcast %cst_29 : f32 to vector<16x512xf32>
    %79 = arith.maximumf %77, %78 : vector<16x512xf32>
    %80 = arith.truncf %79 : vector<16x512xf32> to vector<16x512xbf16>
    %c0_30 = arith.constant 0 : index
    %c0_31 = arith.constant 0 : index
    %81 = vector.load %arg10[%c0_30, %c0_31] : memref<512x128xbf16, #tpu.memory_space<vmem>>, vector<512x128xbf16>
    %cst_32 = arith.constant dense<0.000000e+00> : vector<16x128xf32>
    %82 = tpu.matmul %80, %81, %cst_32 {dimension_numbers = #tpu.dot_dimension_numbers<[1], [0], [0], [1], [0, 0, 1, 1], [], []>} : vector<16x512xbf16>, vector<512x128xbf16>, vector<16x128xf32> -> vector<16x128xf32>
    %c0_33 = arith.constant 0 : index
    %c0_34 = arith.constant 0 : index
    %83 = vector.load %arg11[%c0_33, %c0_34] : memref<1x128xf32, #tpu.memory_space<vmem>>, vector<1x128xf32>
    %84 = vector.broadcast %83 : vector<1x128xf32> to vector<16x128xf32>
    %85 = arith.addf %82, %84 : vector<16x128xf32>
    %86 = arith.addf %71, %85 : vector<16x128xf32>
    %c0_35 = arith.constant 0 : index
    %c0_36 = arith.constant 0 : index
    %87 = vector.load %arg12[%c0_35, %c0_36] : memref<1x128xf32, #tpu.memory_space<vmem>>, vector<1x128xf32>
    %c0_37 = arith.constant 0 : index
    %c0_38 = arith.constant 0 : index
    %88 = vector.load %arg13[%c0_37, %c0_38] : memref<1x128xf32, #tpu.memory_space<vmem>>, vector<1x128xf32>
    %cst_39 = arith.constant dense<0.000000e+00> : vector<16xf32>
    %89 = vector.multi_reduction <add>, %86, %cst_39 [1] : vector<16x128xf32> to vector<16xf32>
    %90 = vector.shape_cast %89 : vector<16xf32> to vector<16x1xf32>
    %cst_40 = arith.constant 1.280000e+02 : f32
    %91 = vector.broadcast %cst_40 : f32 to vector<16x1xf32>
    %92 = arith.divf %90, %91 : vector<16x1xf32>
    %93 = vector.broadcast %92 : vector<16x1xf32> to vector<16x128xf32>
    %94 = arith.subf %86, %93 : vector<16x128xf32>
    %95 = vector.broadcast %92 : vector<16x1xf32> to vector<16x128xf32>
    %96 = arith.subf %86, %95 : vector<16x128xf32>
    %97 = arith.mulf %94, %96 : vector<16x128xf32>
    %cst_41 = arith.constant dense<0.000000e+00> : vector<16xf32>
    %98 = vector.multi_reduction <add>, %97, %cst_41 [1] : vector<16x128xf32> to vector<16xf32>
    %99 = vector.shape_cast %98 : vector<16xf32> to vector<16x1xf32>
    %cst_42 = arith.constant 1.280000e+02 : f32
    %100 = vector.broadcast %cst_42 : f32 to vector<16x1xf32>
    %101 = arith.divf %99, %100 : vector<16x1xf32>
    %102 = vector.broadcast %92 : vector<16x1xf32> to vector<16x128xf32>
    %103 = arith.subf %86, %102 : vector<16x128xf32>
    %cst_43 = arith.constant 9.99999974E-6 : f32
    %104 = vector.broadcast %cst_43 : f32 to vector<16x1xf32>
    %105 = arith.addf %101, %104 : vector<16x1xf32>
    %106 = math.rsqrt %105 : vector<16x1xf32>
    %107 = vector.broadcast %106 : vector<16x1xf32> to vector<16x128xf32>
    %108 = arith.mulf %103, %107 : vector<16x128xf32>
    %109 = vector.broadcast %87 : vector<1x128xf32> to vector<16x128xf32>
    %110 = arith.mulf %108, %109 : vector<16x128xf32>
    %111 = vector.broadcast %88 : vector<1x128xf32> to vector<16x128xf32>
    %112 = arith.addf %110, %111 : vector<16x128xf32>
    %113 = vector.shape_cast %112 : vector<16x128xf32> to vector<2x8x128xf32>
    %c0_44 = arith.constant 0 : index
    %c0_45 = arith.constant 0 : index
    %c0_46 = arith.constant 0 : index
    %114 = vector.load %arg14[%c0_44, %c0_45, %c0_46] : memref<2x8x128xf32, #tpu.memory_space<vmem>>, vector<2x8x128xf32>
    tpu.vector_store %arg14[%c0_44, %c0_45, %c0_46], %113 {strides = array<i32>} : memref<2x8x128xf32, #tpu.memory_space<vmem>>, vector<2x8x128xf32>,
    return
  }
  func.func @transform_0(%arg0: i32) -> (i32, i32, i32) {
    %c0_i32 = arith.constant 0 : i32
    %c0_i32_0 = arith.constant 0 : i32
    %c0_i32_1 = arith.constant 0 : i32
    %c0_i32_2 = arith.constant 0 : i32
    return %c0_i32, %c0_i32_0, %c0_i32_1 : i32, i32, i32
  }
  func.func @transform_1(%arg0: i32) -> (i32, i32) {
    %c0_i32 = arith.constant 0 : i32
    %c0_i32_0 = arith.constant 0 : i32
    %c0_i32_1 = arith.constant 0 : i32
    return %c0_i32, %c0_i32_0 : i32, i32
  }
  func.func @transform_2(%arg0: i32) -> (i32, i32) {
    %c0_i32 = arith.constant 0 : i32
    %c0_i32_0 = arith.constant 0 : i32
    %c0_i32_1 = arith.constant 0 : i32
    return %c0_i32, %c0_i32_0 : i32, i32
  }
  func.func @transform_3(%arg0: i32) -> (i32, i32) {
    %c0_i32 = arith.constant 0 : i32
    %c0_i32_0 = arith.constant 0 : i32
    %c0_i32_1 = arith.constant 0 : i32
    return %c0_i32, %c0_i32_0 : i32, i32
  }
  func.func @transform_4(%arg0: i32) -> (i32, i32) {
    %c0_i32 = arith.constant 0 : i32
    %c0_i32_0 = arith.constant 0 : i32
    %c0_i32_1 = arith.constant 0 : i32
    return %c0_i32, %c0_i32_0 : i32, i32
  }
  func.func @transform_5(%arg0: i32) -> (i32, i32) {
    %c0_i32 = arith.constant 0 : i32
    %c0_i32_0 = arith.constant 0 : i32
    %c0_i32_1 = arith.constant 0 : i32
    return %c0_i32, %c0_i32_0 : i32, i32
  }
  func.func @transform_6(%arg0: i32) -> (i32, i32) {
    %c0_i32 = arith.constant 0 : i32
    %c0_i32_0 = arith.constant 0 : i32
    %c0_i32_1 = arith.constant 0 : i32
    return %c0_i32, %c0_i32_0 : i32, i32
  }
  func.func @transform_7(%arg0: i32) -> (i32, i32) {
    %c0_i32 = arith.constant 0 : i32
    %c0_i32_0 = arith.constant 0 : i32
    %c0_i32_1 = arith.constant 0 : i32
    return %c0_i32, %c0_i32_0 : i32, i32
  }
  func.func @transform_8(%arg0: i32) -> (i32, i32) {
    %c0_i32 = arith.constant 0 : i32
    %c0_i32_0 = arith.constant 0 : i32
    %c0_i32_1 = arith.constant 0 : i32
    return %c0_i32, %c0_i32_0 : i32, i32
  }
  func.func @transform_9(%arg0: i32) -> (i32, i32) {
    %c0_i32 = arith.constant 0 : i32
    %c0_i32_0 = arith.constant 0 : i32
    %c0_i32_1 = arith.constant 0 : i32
    return %c0_i32, %c0_i32_0 : i32, i32
  }
  func.func @transform_10(%arg0: i32) -> (i32, i32) {
    %c0_i32 = arith.constant 0 : i32
    %c0_i32_0 = arith.constant 0 : i32
    %c0_i32_1 = arith.constant 0 : i32
    return %c0_i32, %c0_i32_0 : i32, i32
  }
  func.func @transform_11(%arg0: i32) -> (i32, i32) {
    %c0_i32 = arith.constant 0 : i32
    %c0_i32_0 = arith.constant 0 : i32
    %c0_i32_1 = arith.constant 0 : i32
    return %c0_i32, %c0_i32_0 : i32, i32
  }
  func.func @transform_12(%arg0: i32) -> (i32, i32) {
    %c0_i32 = arith.constant 0 : i32
    %c0_i32_0 = arith.constant 0 : i32
    %c0_i32_1 = arith.constant 0 : i32
    return %c0_i32, %c0_i32_0 : i32, i32
  }
  func.func @transform_13(%arg0: i32) -> (i32, i32, i32) {
    %c0_i32 = arith.constant 0 : i32
    %c0_i32_0 = arith.constant 0 : i32
    %c0_i32_1 = arith.constant 0 : i32
    %c0_i32_2 = arith.constant 0 : i32
    return %c0_i32, %c0_i32_0, %c0_i32_1 : i32, i32, i32
  }
}

</mosaic_0001>

<bundles_post_ra>
// kernel: encoder_forward.1
= control target key start
LH: loop header
LB: loop body
LE: loop exit
PB: predicated region body
PF: predicated region fallthrough
CT: control target
= control target key end

     0   :  { %18 = vsyncpa [#allocation3], 0  ;;  %s4558_s0 = inlined_call_operand.vmem [shape: bf16[2,8,128], index: 0, kind: input, shape index: {}]   ;;  %s4559_s1 = inlined_call_operand.hbm [shape: bf16[128,384], index: 1, kind: input, shape index: {}]   ;;  %s4560_s2 = inlined_call_operand.vmem [shape: f32[1,384], index: 2, kind: input, shape index: {}]   ;;  %s4561_s3 = inlined_call_operand.hbm [shape: bf16[128,128], index: 3, kind: input, shape index: {}]   ;;  %s4562_s4 = inlined_call_operand.vmem [shape: f32[1,128], index: 4, kind: input, shape index: {}]   ;;  %s4563_s5 = inlined_call_operand.vmem [shape: f32[1,128], index: 5, kind: input, shape index: {}]   ;;  %s4564_s6 = inlined_call_operand.vmem [shape: f32[1,128], index: 6, kind: input, shape index: {}]   ;;  %s4565_s7 = inlined_call_operand.hbm [shape: bf16[128,512], index: 7, kind: input, shape index: {}]   ;;  %s4566_s8 = inlined_call_operand.vmem [shape: f32[1,512], index: 8, kind: input, shape index: {}]   ;;  %s4567_s9 = inlined_call_operand.hbm [shape: bf16[512,128], index: 9, kind: input, shape index: {}]   ;;  %s4568_s10 = inlined_call_operand.vmem [shape: f32[1,128], index: 10, kind: input, shape index: {}]   ;;  %s4569_s11 = inlined_call_operand.vmem [shape: f32[1,128], index: 11, kind: input, shape index: {}]   ;;  %s4570_s12 = inlined_call_operand.vmem [shape: f32[1,128], index: 12, kind: input, shape index: {}]   ;;  %s4571_s13 = inlined_call_operand.hbm [shape: f32[2,8,128], index: 13, kind: output, shape index: {}]  }
   0x1   :  { %19 = vsyncpa [#allocation6], 0 }
   0x2   :  { %20 = vsyncpa [#allocation9], 0 }
   0x3   :  { %21 = vsyncpa [#allocation4], 0  ;;  %s3959_s25 = smov [#allocation5]  }
   0x4   :  { %s43_s26 = sshll.u32 %s3959_s25, 4  ;;  %s44_s26 = int_to_ptr.vmem [resolvable:$true] %s43_s26 }
   0x5   :  { %s3859_s27 = scalar_lea.vmem %s44_s26, 1024  ;;  %p3864_p1 = scmp.lt.s32.totalorder %s44_s26, %s44_s26 }
   0x6   :  { %p3860_p0 = scmp.ne.s32.totalorder %s44_s26, %s3859_s27  ;;  %p3865_p2 = scmp.lt.s32.totalorder %s3859_s27, %s3859_s27 }
   0x8   :  { %p3866_p3 = por %p3865_p2, %p3864_p1 }
   0xa   :  { %p3867_p4 = pnand %p3866_p3, %p3860_p0 }
   0xc   :  { %3870 = shalt.err (!%p3867_p4)
}
   0xd   :  { %s3960_s28 = smov 64   ;;  %s3961_s29 = smov 4  }
   0xe   :  { %49 = dma.hbm_to_vmem [thread:$0]  %s4561_s3, 1024, %s44_s26, [#allocation6], %s3960_s28, %s3960_s28, %s3961_s29  }
   0xf   :  { %s3962_s15 = smov [#allocation2]  }
  0x10   :  { %s29_s16 = sshll.u32 %s3962_s15, 4  ;;  %s30_s16 = int_to_ptr.vmem [resolvable:$true] %s29_s16 }
  0x11   :  { %s3879_s17 = scalar_lea.vmem %s30_s16, 3072  ;;  %p3884_p6 = scmp.lt.s32.totalorder %s30_s16, %s30_s16 }
  0x12   :  { %p3880_p5 = scmp.ne.s32.totalorder %s30_s16, %s3879_s17  ;;  %p3885_p7 = scmp.lt.s32.totalorder %s3879_s17, %s3879_s17 }
  0x14   :  { %p3886_p8 = por %p3885_p7, %p3884_p6 }
  0x16   :  { %p3887_p9 = pnand %p3886_p8, %p3880_p5 }
  0x18   :  { %3890 = shalt.err (!%p3887_p9)
}
  0x19   :  { %s3963_s18 = smov 192   ;;  %s3964_s19 = smov 12  }
  0x1a   :  { %35 = dma.hbm_to_vmem [thread:$0]  %s4559_s1, 3072, %s30_s16, [#allocation3], %s3963_s18, %s3963_s18, %s3964_s19  }
  0x1b   :  { %s3965_s22 = smov [#allocation7]  }
  0x1c   :  { %s61_s23 = sshll.u32 %s3965_s22, 4  ;;  %s62_s23 = int_to_ptr.vmem [resolvable:$true] %s61_s23 }
  0x1d   :  { %s3899_s3 = scalar_lea.vmem %s62_s23, 4096  ;;  %p3904_p11 = scmp.lt.s32.totalorder %s62_s23, %s62_s23 }
  0x1e   :  { %p3900_p10 = scmp.ne.s32.totalorder %s62_s23, %s3899_s3  ;;  %p3905_p12 = scmp.lt.s32.totalorder %s3899_s3, %s3899_s3 }
  0x20   :  { %p3906_p13 = por %p3905_p12, %p3904_p11 }
  0x22   :  { %p3907_p0 = pnand %p3906_p13, %p3900_p10 }
  0x24   :  { %3910 = shalt.err (!%p3907_p0)
}
  0x25   :  { %s3966_s24 = smov 256   ;;  %s3967_s25 = smov 16  }
  0x26   :  { %67 = dma.hbm_to_vmem [thread:$0]  %s4565_s7, 4096, %s62_s23, [#allocation6], %s3966_s24, %s3966_s24, %s3967_s25  }
  0x27   :  { %s3968_s30 = smov [#allocation8]  }
  0x28   :  { %s75_s14 = sshll.u32 %s3968_s30, 4  ;;  %s76_s14 = int_to_ptr.vmem [resolvable:$true] %s75_s14 }
  0x29   :  { %s3919_s1 = scalar_lea.vmem %s76_s14, 4096  ;;  %p3924_p2 = scmp.lt.s32.totalorder %s76_s14, %s76_s14 }
  0x2a   :  { %p3920_p1 = scmp.ne.s32.totalorder %s76_s14, %s3919_s1  ;;  %p3925_p3 = scmp.lt.s32.totalorder %s3919_s1, %s3919_s1 }
  0x2c   :  { %p3926_p4 = por %p3925_p3, %p3924_p2 }
  0x2e   :  { %p3927_p5 = pnand %p3926_p4, %p3920_p1 }
  0x30   :  { %3930 = shalt.err (!%p3927_p5)
}
  0x31   :  { %81 = dma.hbm_to_vmem [thread:$0]  %s4567_s9, 4096, %s76_s14, [#allocation9], %s3960_s28, %s3960_s28, %s3961_s29  }
  0x32   :  { %3951 = dma.done.wait [#allocation3], 3072  }
  0x33   :  { %3952 = vsyncadd [#allocation3], 4294964224 }
  0x34   :  { %3953 = dma.done.wait [#allocation6], 5120  }
  0x35   :  { %3954 = vsyncadd [#allocation6], 4294962176 }
  0x36   :  { %3955 = dma.done.wait [#allocation9], 4096  }
  0x37   :  { %3956 = vsyncadd [#allocation9], 4294963200  ;;  %v3969_v0 = vmov 0   ;;  %v3688_v1 = vld [vmem:[#allocation2 + $0xac] ss:$12 sps:$4 sm:$0xff]   ;;  %v101_v17 = vld [vmem:[%s4558_s0] sm:$0xff]   ;;  %v139_v25 = vlaneseq }
  0x38   :  { %320 = vmatprep.mubr.bf16.mxu0 %v3969_v0  ;;  %v3690_v2 = vld [vmem:[#allocation2 + $0xa8] ss:$12 sps:$4 sm:$0xff]   ;;  %288 = vmatprep.subr.bf16.mxu0 %v3688_v1  ;;  %v3693_v4 = vld [vmem:[#allocation2 + $0x90] ss:$12 sps:$4 sm:$0xff]   ;;  %v3696_v6 = vld [vmem:[#allocation2 + $0x78] ss:$12 sps:$4 sm:$0xff]  }
  0x39   :  { %v3691_v3 = vld [vmem:[#allocation2 + $0x94] ss:$12 sps:$4 sm:$0xff]   ;;  %289 = vmatpush1.bf16.msra.mxu0 %v3690_v2  ;;  %v3694_v5 = vld [vmem:[#allocation2 + $0x7c] ss:$12 sps:$4 sm:$0xff]   ;;  %v3697_v7 = vld [vmem:[#allocation2 + $0x64] ss:$12 sps:$4 sm:$0xff]  }
  0x3a   :  { %290 = vmatprep.subr.bf16.mxu0 %v3691_v3  ;;  %v3699_v8 = vld [vmem:[#allocation2 + $0x60] ss:$12 sps:$4 sm:$0xff]   ;;  %v3702_v10 = vld [vmem:[#allocation2 + $0x48] ss:$12 sps:$4 sm:$0xff]   ;;  %v3705_v12 = vld [vmem:[#allocation2 + $0x30] ss:$12 sps:$4 sm:$0xff]  }
  0x3b   :  { %v3700_v9 = vld [vmem:[#allocation2 + $0x4c] ss:$12 sps:$4 sm:$0xff]   ;;  %v3703_v11 = vld [vmem:[#allocation2 + $0x34] ss:$12 sps:$4 sm:$0xff]   ;;  %v3706_v13 = vld [vmem:[#allocation2 + $0x1c] ss:$12 sps:$4 sm:$0xff]  }
  0x3c   :  { %v3708_v14 = vld [vmem:[#allocation2 + $0x18] ss:$12 sps:$4 sm:$0xff]   ;;  %v3711_v16 = vld [vmem:[#allocation2] ss:$12 sps:$4 sm:$0xff]   ;;  %v3713_v18 = vld [vmem:[#allocation2 + $0xb0] ss:$12 sps:$4 sm:$0xff]  }
  0x3d   :  { %291 = vmatpush1.bf16.msra.mxu0 %v3693_v4  ;;  %v3709_v15 = vld [vmem:[#allocation2 + $0x4] ss:$12 sps:$4 sm:$0xff]   ;;  %v3970_v19 = vmov 0.0   ;;  %v3715_v21 = vld [vmem:[#allocation2 + $0x80] ss:$12 sps:$4 sm:$0xff]   ;;  %v4079_v27 = vshrl.u32 %v139_v25, 7 }
  0x3e   :  { %292 = vmatprep.subr.bf16.mxu0 %v3694_v5  ;;  %3517 = vmatprep.subr.bf16.mxu1 %v3970_v19  ;;  %v3714_v20 = vld [vmem:[#allocation2 + $0x98] ss:$12 sps:$4 sm:$0xff]   ;;  %v3716_v22 = vld [vmem:[#allocation2 + $0x68] ss:$12 sps:$4 sm:$0xff]   ;;  %v3717_v23 = vld [vmem:[#allocation2 + $0x50] ss:$12 sps:$4 sm:$0xff]  }
  0x3f   :  { %3518 = vmatpush3.bf16.msra.mxu1 %v3713_v18  ;;  %v3718_v24 = vld [vmem:[#allocation2 + $0x38] ss:$12 sps:$4 sm:$0xff]   ;;  %v3719_v26 = vld [vmem:[#allocation2 + $0x20] ss:$12 sps:$4 sm:$0xff]   ;;  %v3720_v28 = vld [vmem:[#allocation2 + $0x8] ss:$12 sps:$4 sm:$0xff]  }
  0x40   :  { %3519 = vmatprep.subr.bf16.mxu1 %v3970_v19  ;;  %v145_v29 = vsub.s32 1, %v4079_v27  ;;  %v4087_v30 = vld [vmem:[%s4560_s2] sm:$0x7]  ;;  %vm3971_vm0 = vmmov 0   ;;  %v141_v31 = vsub.s32 0, %v4079_v27  ;;  %s3972_s2 = smov 32  }
  0x41   :  { %293 = vmatpush1.bf16.msra.mxu0 %v3696_v6  ;;  %3533 = vmatprep.mubr.msk.bf16.mxu1 %vm3971_vm0, %v3970_v19  ;;  %s3973_s18 = smov 96   ;;  %v3974_v42 = vmov 1983009808   ;;  %v3975_v44 = vmov 1934713408   ;;  %vm1272_vm1 = vcmask 261120  }
  0x42   :  { %294 = vmatprep.subr.bf16.mxu0 %v3697_v7  ;;  %v146_v32 = vrot.slane %v4087_v30, %v145_v29  ;;  %v142_v35 = vrot.slane %v4087_v30, %v141_v31  ;;  %v395_v43 = vunpack.c.l.s4 %v3974_v42  ;;  %v427_v45 = vunpack.c.l.s4 %v3975_v44  ;;  %s3976_s27 = smov [#allocation10]  }
  0x43   :  { %3520 = vmatpush3.bf16.msra.mxu1 %v3714_v20  ;;  %vm1641_vm2 = vcmask 64512   ;;  %vm1741_vm3 = vcmask 1043456   ;;  %vm2405_vm4 = vcmask 523264   ;;  %vm2408_vm5 = vcmask 785408   ;;  %s3274_s30 = sshll.u32 %s3976_s27, 4  ;;  %s3275_s30 = int_to_ptr.vmem [resolvable:$true] %s3274_s30 }
  0x44   :  { %3521 = vmatprep.subr.bf16.mxu1 %v3970_v19  ;;  %v396_v46 = vunpack.c.0.s8 %v395_v43  ;;  %v428_v49 = vunpack.c.0.s8 %v427_v45  ;;  %s3931_s14 = scalar_lea.vmem %s3275_s30, 256  ;;  %p3936_p7 = scmp.lt.s32.totalorder %s3275_s30, %s3275_s30 }
  0x45   :  { %295 = vmatpush1.bf16.msra.mxu0 %v3699_v8  ;;  %p3932_p6 = scmp.ne.s32.totalorder %s3275_s30, %s3931_s14  ;;  %p3937_p8 = scmp.lt.s32.totalorder %s3931_s14, %s3931_s14 }
  0x46   :  { %296 = vmatprep.subr.bf16.mxu0 %v3700_v9  ;;  %v4125_v50 = vsub.s32 %v396_v46, %v4079_v27  ;;  %v4128_v57 = vsub.s32 %v428_v49, %v4079_v27 }
  0x47   :  { %3522 = vmatpush3.bf16.msra.mxu1 %v3715_v21  ;;  %p3938_p9 = por %p3937_p8, %p3936_p7 }
  0x48   :  { %3523 = vmatprep.subr.bf16.mxu1 %v3970_v19 }
  0x49   :  { %297 = vmatpush1.bf16.msra.mxu0 %v3702_v10  ;;  %p3939_p10 = pnand %p3938_p9, %p3932_p6 }
  0x4a   :  { %298 = vmatprep.subr.bf16.mxu0 %v3703_v11 }
  0x4b   :  { %3524 = vmatpush3.bf16.msra.mxu1 %v3716_v22 }
  0x4c   :  { %3525 = vmatprep.subr.bf16.mxu1 %v3970_v19 }
  0x4d   :  { %299 = vmatpush1.bf16.msra.mxu0 %v3705_v12 }
  0x4e   :  { %300 = vmatprep.subr.bf16.mxu0 %v3706_v13 }
  0x4f   :  { %3526 = vmatpush3.bf16.msra.mxu1 %v3717_v23 }
  0x50   :  { %3527 = vmatprep.subr.bf16.mxu1 %v3970_v19 }
  0x51   :  { %301 = vmatpush1.bf16.msra.mxu0 %v3708_v14 }
  0x52   :  { %302 = vmatprep.subr.bf16.mxu0 %v3709_v15 }
  0x53   :  { %3528 = vmatpush3.bf16.msra.mxu1 %v3718_v24 }
  0x54   :  { %3529 = vmatprep.subr.bf16.mxu1 %v3970_v19 }
  0x55   :  { %303 = vmatpush1.bf16.msra.mxu0 %v3711_v16 }
  0x56   :  { %3561 = vmatprep.subr.bf16.mxu0 %v3970_v19 }
  0x57   :  { %3530 = vmatpush3.bf16.msra.mxu1 %v3719_v26 }
  0x58   :  { %321 = vmatmul.mubr.bf16.vlgmr.msra.gmra.mxu0 %v101_v17  ;;  %3531 = vmatprep.subr.bf16.mxu1 %v3970_v19 }
  0x59   :  { %3563 = vmatprep.mubr.msk.bf16.mxu0 %vm3971_vm0, %v3970_v19 }
  0x5b   :  { %3532 = vmatpush3.bf16.msra.mxu1 %v3720_v28 }
  0x5c   :  { %3537 = vmatprep.subr.bf16.mxu1 %v3970_v19 }
  0x5e   :  { %3534 = vmatmul.mubr.bf16.vlgmr.msra.gmra.mxu1 %v101_v17 }
  0x5f   :  { %3539 = vmatprep.mubr.msk.bf16.mxu1 %vm3971_vm0, %v3970_v19 }
 0x118   :  { %v322_v33 = vpop.f32.mrf.mxu0 }
 0x119   :  { %v323_v37 = vadd.f32 %v322_v33, %v142_v35 }
 0x11a   :  { %v324_v34 = vpop.f32.mrf.mxu0 }
 0x11b   :  { %v325_v36 = vadd.f32 %v324_v34, %v146_v32 }
 0x11c   :  { %v326_v38 = vpop.f32.mrf.mxu0 }
 0x11d   :  { %686 = vrot.lane.b32.xlu1 %v325_v36, %s3972_s2  ;;  %674 = vrot.lane.b32.xlu0 %v325_v36, %s3973_s18  ;;  %v4114_v41 = vadd.f32 %v326_v38, %v142_v35 }
 0x11e   :  { %v328_v39 = vpop.f32.mrf.mxu0 }
 0x11f   :  { %v4108_v40 = vadd.f32 %v328_v39, %v146_v32 }
 0x121   :  { %680 = vrot.lane.b32.xlu0 %v325_v36, %s3960_s28  ;;  %374 = vrot.lane.b32.xlu1 %v323_v37, %s3973_s18 }
 0x125   :  { %380 = vrot.lane.b32.xlu0 %v323_v37, %s3960_s28  ;;  %386 = vrot.lane.b32.xlu1 %v323_v37, %s3972_s2 }
 0x129   :  { %676 = vrot.lane.b32.xlu0 %v4108_v40, %s3973_s18  ;;  %682 = vrot.lane.b32.xlu1 %v4108_v40, %s3960_s28 }
 0x12d   :  { %688 = vrot.lane.b32.xlu0 %v4108_v40, %s3972_s2  ;;  %376 = vrot.lane.b32.xlu1 %v4114_v41, %s3973_s18 }
 0x131   :  { %382 = vrot.lane.b32.xlu0 %v4114_v41, %s3960_s28  ;;  %388 = vrot.lane.b32.xlu1 %v4114_v41, %s3972_s2 }
 0x18f   :  { %v687_v47 = vpop.permute.xlu1 %686  ;;  %v675_v48 = vpop.permute.xlu0 %674 }
 0x190   :  { %v708_v51 = vcombine.low %v675_v48, %v687_v47  ;;  %v709_v52 = vcombine.high %v675_v48, %v687_v47 }
 0x192   :  { %v716_v58 = vrot.slane %v708_v51, %v4125_v50  ;;  %v723_v59 = vrot.slane %v709_v52, %v4125_v50 }
 0x193   :  { %v681_v53 = vpop.permute.xlu0 %680  ;;  %v375_v54 = vpop.permute.xlu1 %374 }
 0x194   :  { %v692_v55 = vcombine.low %v325_v36, %v681_v53  ;;  %v693_v56 = vcombine.high %v325_v36, %v681_v53 }
 0x196   :  { %v700_v60 = vrot.slane %v692_v55, %v4125_v50  ;;  %v707_v61 = vrot.slane %v693_v56, %v4125_v50 }
 0x197   :  { %v381_v62 = vpop.permute.xlu0 %380  ;;  %v387_v63 = vpop.permute.xlu1 %386 }
 0x198   :  { %v724_v1 = vcombine.low %v700_v60, %v716_v58  ;;  %v725_v2 = vcombine.high %v700_v60, %v716_v58  ;;  %v740_v3 = vcombine.low %v707_v61, %v723_v59  ;;  %v741_v4 = vcombine.high %v707_v61, %v723_v59 }
 0x199   :  { %v392_v5 = vcombine.low %v323_v37, %v381_v62  ;;  %v393_v6 = vcombine.high %v323_v37, %v381_v62  ;;  %v408_v7 = vcombine.low %v375_v54, %v387_v63  ;;  %v409_v8 = vcombine.high %v375_v54, %v387_v63 }
 0x19a   :  { %v732_v9 = vrot.slane %v724_v1, %v4128_v57  ;;  %v739_v10 = vrot.slane %v725_v2, %v4128_v57  ;;  %v748_v11 = vrot.slane %v740_v3, %v4128_v57  ;;  %v755_v12 = vrot.slane %v741_v4, %v4128_v57 }
 0x19b   :  { %v400_v13 = vrot.slane %v392_v5, %v4125_v50  ;;  %v407_v14 = vrot.slane %v393_v6, %v4125_v50  ;;  %v416_v15 = vrot.slane %v408_v7, %v4125_v50  ;;  %v423_v16 = vrot.slane %v409_v8, %v4125_v50  ;;  %v677_v17 = vpop.permute.xlu0 %676  ;;  %v683_v18 = vpop.permute.xlu1 %682 }
 0x19c   :  { %v828_v24 = vcombine.low %v732_v9, %v739_v10  ;;  %v3317_v25 = vcombine.high %v732_v9, %v739_v10  ;;  %v844_v26 = vcombine.low %v748_v11, %v755_v12  ;;  %v760_v37 = vcombine.low %v4108_v40, %v683_v18 }
 0x19d   :  { %v424_v20 = vcombine.low %v400_v13, %v416_v15  ;;  %v425_v21 = vcombine.high %v400_v13, %v416_v15  ;;  %v440_v22 = vcombine.low %v407_v14, %v423_v16  ;;  %v441_v23 = vcombine.high %v407_v14, %v423_v16 }
 0x19e   :  { %v761_v38 = vcombine.high %v4108_v40, %v683_v18  ;;  %v3318_v43 = vcombine.high %v748_v11, %v755_v12  ;;  %v768_v47 = vrot.slane %v760_v37, %v4125_v50  ;;  %v4153_v52 = vrot.slane %v828_v24, %v4125_v50 }
 0x19f   :  { %v432_v28 = vrot.slane %v424_v20, %v4128_v57  ;;  %v439_v32 = vrot.slane %v425_v21, %v4128_v57  ;;  %v448_v33 = vrot.slane %v440_v22, %v4128_v57  ;;  %v455_v34 = vrot.slane %v441_v23, %v4128_v57  ;;  %v689_v35 = vpop.permute.xlu0 %688  ;;  %v377_v36 = vpop.permute.xlu1 %376 }
 0x1a0   :  { %v776_v39 = vcombine.low %v677_v17, %v689_v35  ;;  %v777_v42 = vcombine.high %v677_v17, %v689_v35  ;;  %v775_v48 = vrot.slane %v761_v38, %v4125_v50  ;;  %v4156_v53 = vrot.slane %v3317_v25, %v4125_v50 }
 0x1a1   :  { %v528_v44 = vcombine.low %v432_v28, %v439_v32  ;;  %v3313_v45 = vcombine.high %v432_v28, %v439_v32  ;;  %v544_v46 = vcombine.low %v448_v33, %v455_v34  ;;  %v4159_v40 = vrot.slane %v844_v26, %v4125_v50 }
 0x1a2   :  { %v784_v49 = vrot.slane %v776_v39, %v4125_v50  ;;  %v791_v51 = vrot.slane %v777_v42, %v4125_v50  ;;  %v3314_v54 = vcombine.high %v448_v33, %v455_v34  ;;  %v4162_v62 = vrot.slane %v3318_v43, %v4125_v50 }
 0x1a3   :  { %v383_v60 = vpop.permute.xlu0 %382  ;;  %v389_v61 = vpop.permute.xlu1 %388  ;;  %v4165_v63 = vrot.slane %v528_v44, %v4125_v50  ;;  %v4168_v1 = vrot.slane %v3313_v45, %v4125_v50  ;;  %v4171_v2 = vrot.slane %v544_v46, %v4125_v50  ;;  %v860_v33 = vcombine.low %v4153_v52, %v4156_v53 }
 0x1a4   :  { %v792_v55 = vcombine.low %v768_v47, %v784_v49  ;;  %v793_v56 = vcombine.high %v768_v47, %v784_v49  ;;  %v808_v58 = vcombine.low %v775_v48, %v791_v51  ;;  %v809_v59 = vcombine.high %v775_v48, %v791_v51 }
 0x1a5   :  { %v460_v7 = vcombine.low %v4114_v41, %v383_v60  ;;  %v461_v8 = vcombine.high %v4114_v41, %v383_v60  ;;  %v476_v9 = vcombine.low %v377_v36, %v389_v61  ;;  %v477_v10 = vcombine.high %v377_v36, %v389_v61 }
 0x1a6   :  { %v800_v3 = vrot.slane %v792_v55, %v4128_v57  ;;  %v807_v4 = vrot.slane %v793_v56, %v4128_v57  ;;  %v816_v5 = vrot.slane %v808_v58, %v4128_v57  ;;  %v823_v6 = vrot.slane %v809_v59, %v4128_v57 }
 0x1a7   :  { %v4180_v11 = vrot.slane %v3314_v54, %v4125_v50  ;;  %v468_v15 = vrot.slane %v460_v7, %v4125_v50  ;;  %v475_v16 = vrot.slane %v461_v8, %v4125_v50  ;;  %v484_v17 = vrot.slane %v476_v9, %v4125_v50 }
 0x1a8   :  { %v896_v12 = vcombine.low %v800_v3, %v807_v4  ;;  %v3319_v13 = vcombine.high %v800_v3, %v807_v4  ;;  %v912_v14 = vcombine.low %v816_v5, %v823_v6  ;;  %v491_v18 = vrot.slane %v477_v10, %v4125_v50 }
 0x1a9   :  { %v560_v20 = vcombine.low %v4165_v63, %v4168_v1  ;;  %v3320_v22 = vcombine.high %v816_v5, %v823_v6  ;;  %v492_v23 = vcombine.low %v468_v15, %v484_v17  ;;  %v493_v24 = vcombine.high %v468_v15, %v484_v17 }
 0x1aa   :  { %v903_v41 = vrot.slane %v896_v12, %v4125_v50  ;;  %v911_v21 = vrot.slane %v3319_v13, %v4125_v50  ;;  %v508_v25 = vcombine.low %v475_v16, %v491_v18  ;;  %v509_v26 = vcombine.high %v475_v16, %v491_v18 }
 0x1ab   :  { %v576_v28 = vcombine.low %v4171_v2, %v4180_v11  ;;  %v919_v32 = vrot.slane %v912_v14, %v4125_v50  ;;  %v876_v34 = vcombine.low %v4159_v40, %v4162_v62  ;;  %v500_v35 = vrot.slane %v492_v23, %v4128_v57 }
 0x1ac   :  { %v507_v36 = vrot.slane %v493_v24, %v4128_v57  ;;  %v516_v37 = vrot.slane %v508_v25, %v4128_v57  ;;  %v523_v38 = vrot.slane %v509_v26, %v4128_v57  ;;  %v927_v39 = vrot.slane %v3320_v22, %v4125_v50 }
 0x1ad   :  { %v868_v42 = vrot.slane %v860_v33, %v4128_v57  ;;  %v884_v43 = vrot.slane %v876_v34, %v4128_v57  ;;  %v928_v44 = vcombine.low %v903_v41, %v911_v21  ;;  %v568_v51 = vrot.slane %v560_v20, %v4128_v57 }
 0x1ae   :  { %v596_v45 = vcombine.low %v500_v35, %v507_v36  ;;  %v3315_v46 = vcombine.high %v500_v35, %v507_v36  ;;  %v612_v47 = vcombine.low %v516_v37, %v523_v38  ;;  %v3316_v48 = vcombine.high %v516_v37, %v523_v38 }
 0x1af   :  { %v892_v49 = vcombine.low %v868_v42, %v884_v43  ;;  %v584_v60 = vrot.slane %v576_v28, %v4128_v57  ;;  %v4211_v61 = vrot.slane %v928_v44, %v4128_v57  ;;  %v944_v3 = vcombine.low %v919_v32, %v927_v39 }
 0x1b0   :  { %v603_v54 = vrot.slane %v596_v45, %v4125_v50  ;;  %v611_v55 = vrot.slane %v3315_v46, %v4125_v50  ;;  %v619_v56 = vrot.slane %v612_v47, %v4125_v50  ;;  %v627_v58 = vrot.slane %v3316_v48, %v4125_v50 }
 0x1b1   :  { %v964_v59 = vpack.c.bf16 %v892_v49, %v892_v49  ;;  %v893_v6 = vcombine.high %v868_v42, %v884_v43  ;;  %v952_v8 = vrot.slane %v944_v3, %v4128_v57  ;;  %v861_v9 = vcombine.high %v4153_v52, %v4156_v53 }
 0x1b2   :  { %v628_v4 = vcombine.low %v603_v54, %v611_v55  ;;  %v644_v5 = vcombine.low %v619_v56, %v627_v58  ;;  %v877_v10 = vcombine.high %v4159_v40, %v4162_v62  ;;  %v592_v12 = vcombine.low %v568_v51, %v584_v60 }
 0x1b3   :  { %v1277_v7 = vsel %vm1272_vm1, %v964_v59, 0  ;;  %v960_v13 = vcombine.low %v4211_v61, %v952_v8  ;;  %v929_v14 = vcombine.high %v903_v41, %v911_v21  ;;  %v945_v15 = vcombine.high %v919_v32, %v927_v39 }
 0x1b4   :  { %3538 = vmatpush3.bf16.xpose.msra.mxu1 %v1277_v7  ;;  %v965_v16 = vpack.c.bf16 %v893_v6, %v893_v6  ;;  %v875_v17 = vrot.slane %v861_v9, %v4128_v57  ;;  %v4223_v18 = vrot.slane %v628_v4, %v4128_v57  ;;  %v4226_v20 = vrot.slane %v644_v5, %v4128_v57  ;;  %v365_v4 = vpop.f32.mrf.mxu1 }
 0x1b5   :  { %3543 = vmatprep.subr.bf16.mxu1 %v3970_v19  ;;  %v968_v52 = vpack.c.bf16 %v960_v13, %v960_v13  ;;  %v891_v53 = vrot.slane %v877_v10, %v4128_v57  ;;  %v943_v40 = vrot.slane %v929_v14, %v4128_v57  ;;  %v959_v62 = vrot.slane %v945_v15, %v4128_v57 }
 0x1b6   :  { %v664_v22 = vpack.c.bf16 %v592_v12, %v592_v12  ;;  %v629_v23 = vcombine.high %v603_v54, %v611_v55  ;;  %v645_v24 = vcombine.high %v619_v56, %v627_v58  ;;  %v1323_v25 = vsel %vm1272_vm1, %v965_v16, 0  ;;  %v3535_v7 = vpop.f32.mrf.mxu1 }
 0x1b7   :  { %v1461_v41 = vsel %vm1272_vm1, %v968_v52, 0  ;;  %v962_v21 = vcombine.low %v943_v40, %v959_v62  ;;  %v894_v26 = vcombine.low %v875_v17, %v891_v53  ;;  %v660_v28 = vcombine.low %v4223_v18, %v4226_v20 }
 0x1b8   :  { %3562 = vmatpush3.bf16.xpose.msra.mxu0 %v1461_v41  ;;  %v561_v32 = vcombine.high %v4165_v63, %v4168_v1  ;;  %v577_v33 = vcombine.high %v4171_v2, %v4180_v11  ;;  %v593_v34 = vcombine.high %v568_v51, %v584_v60  ;;  %v643_v38 = vrot.slane %v629_v23, %v4128_v57  ;;  %v368_v9 = vpop.f32.mrf.mxu1 }
 0x1b9   :  { %3573 = vmatprep.subr.bf16.mxu0 %v3970_v19  ;;  %v970_v35 = vpack.c.bf16 %v962_v21, %v962_v21  ;;  %v966_v36 = vpack.c.bf16 %v894_v26, %v894_v26  ;;  %v668_v37 = vpack.c.bf16 %v660_v28, %v660_v28  ;;  %v659_v39 = vrot.slane %v645_v24, %v4128_v57 }
 0x1ba   :  { %v665_v42 = vpack.c.bf16 %v593_v34, %v593_v34  ;;  %v575_v63 = vrot.slane %v561_v32, %v4128_v57  ;;  %v591_v1 = vrot.slane %v577_v33, %v4128_v57  ;;  %v895_v11 = vcombine.high %v875_v17, %v891_v53  ;;  %v3536_v12 = vpop.f32.mrf.mxu1 }
 0x1bb   :  { %3540 = vmatmul.mubr.msk.bf16.vlgmr.msra.gmra.mxu1 %vm1272_vm1, %v664_v22  ;;  %v1553_v43 = vsel %vm1272_vm1, %v970_v35, 0  ;;  %v1369_v2 = vsel %vm1272_vm1, %v966_v36, 0  ;;  %v662_v44 = vcombine.low %v643_v38, %v659_v39  ;;  %v961_v51 = vcombine.high %v4211_v61, %v952_v8 }
 0x1bc   :  { %3544 = vmatpush3.bf16.xpose.msra.mxu1 %v1323_v25  ;;  %3545 = vmatprep.mubr.msk.bf16.mxu1 %vm3971_vm0, %v3970_v19  ;;  %v594_v45 = vcombine.low %v575_v63, %v591_v1  ;;  %v967_v46 = vpack.c.bf16 %v895_v11, %v895_v11  ;;  %v595_v54 = vcombine.high %v575_v63, %v591_v1  ;;  %v149_v56 = vsub.s32 2, %v4079_v27 }
 0x1bd   :  { %3549 = vmatprep.subr.bf16.mxu1 %v3970_v19  ;;  %v670_v47 = vpack.c.bf16 %v662_v44, %v662_v44  ;;  %v969_v55 = vpack.c.bf16 %v961_v51, %v961_v51  ;;  %v963_v60 = vcombine.high %v943_v40, %v959_v62  ;;  %v661_v3 = vcombine.high %v4223_v18, %v4226_v20 }
 0x1be   :  { %v666_v48 = vpack.c.bf16 %v594_v45, %v594_v45  ;;  %v1415_v49 = vsel %vm1272_vm1, %v967_v46, 0  ;;  %v667_v58 = vpack.c.bf16 %v595_v54, %v595_v54  ;;  %v150_v61 = vrot.slane %v4087_v30, %v149_v56 }
 0x1bf   :  { %3564 = vmatmul.mubr.msk.bf16.vlgmr.msra.gmra.mxu0 %vm1272_vm1, %v668_v37  ;;  %v1507_v59 = vsel %vm1272_vm1, %v969_v55, 0  ;;  %v971_v5 = vpack.c.bf16 %v963_v60, %v963_v60  ;;  %v669_v8 = vpack.c.bf16 %v661_v3, %v661_v3  ;;  %v663_v13 = vcombine.high %v643_v38, %v659_v39 }
 0x1c0   :  { %3574 = vmatpush3.bf16.xpose.msra.mxu0 %v1553_v43  ;;  %3575 = vmatprep.mubr.msk.bf16.mxu0 %vm3971_vm0, %v3970_v19  ;;  %v4278_v6 = vadd.f32 %v365_v4, %v150_v61  ;;  %v4284_v10 = vadd.f32 %v368_v9, %v150_v61 }
 0x1c1   :  { %3585 = vmatprep.subr.bf16.mxu0 %v3970_v19  ;;  %v1599_v30 = vsel %vm1272_vm1, %v971_v5, 0  ;;  %v671_v14 = vpack.c.bf16 %v663_v13, %v663_v13 }
 0x1c2   :  { %974 = vrot.lane.b32.xlu1 %v4278_v6, %s3973_s18 }
 0x1c3   :  { %3546 = vmatmul.mubr.msk.bf16.vlgmr.msra.gmra.mxu1 %vm1272_vm1, %v665_v42 }
 0x1c4   :  { %3550 = vmatpush3.bf16.xpose.msra.mxu1 %v1369_v2  ;;  %3551 = vmatprep.mubr.msk.bf16.mxu1 %vm3971_vm0, %v3970_v19 }
 0x1c5   :  { %3555 = vmatprep.subr.bf16.mxu1 %v3970_v19 }
 0x1c7   :  { %3576 = vmatmul.mubr.msk.bf16.vlgmr.msra.gmra.mxu0 %vm1272_vm1, %v670_v47 }
 0x1c8   :  { %3587 = vmatprep.mubr.msk.bf16.mxu0 %vm3971_vm0, %v3970_v19 }
 0x1cb   :  { %3552 = vmatmul.mubr.msk.bf16.vlgmr.msra.gmra.mxu1 %vm1272_vm1, %v666_v48 }
 0x1cc   :  { %3556 = vmatpush3.bf16.xpose.msra.mxu1 %v1415_v49  ;;  %3557 = vmatprep.mubr.msk.bf16.mxu1 %vm3971_vm0, %v3970_v19 }
 0x1cd   :  { %3567 = vmatprep.subr.bf16.mxu1 %v3970_v19 }
 0x1d3   :  { %3558 = vmatmul.mubr.msk.bf16.vlgmr.msra.gmra.mxu1 %vm1272_vm1, %v667_v58 }
 0x1d4   :  { %3568 = vmatpush3.bf16.xpose.msra.mxu1 %v1507_v59  ;;  %3569 = vmatprep.mubr.msk.bf16.mxu1 %vm3971_vm0, %v3970_v19 }
 0x1d5   :  { %3579 = vmatprep.subr.bf16.mxu1 %v3970_v19 }
 0x1db   :  { %3570 = vmatmul.mubr.msk.bf16.vlgmr.msra.gmra.mxu1 %vm1272_vm1, %v669_v8 }
 0x1dc   :  { %3580 = vmatpush3.bf16.xpose.msra.mxu1 %v1599_v30  ;;  %3581 = vmatprep.mubr.msk.bf16.mxu1 %vm3971_vm0, %v3970_v19 }
 0x1dd   :  { %3591 = vmatprep.subr.bf16.mxu1 %v3970_v19 }
 0x1e3   :  { %3582 = vmatmul.mubr.msk.bf16.vlgmr.msra.gmra.mxu1 %vm1272_vm1, %v671_v14 }
 0x1e4   :  { %3593 = vmatprep.mubr.msk.bf16.mxu1 %vm3971_vm0, %v3970_v19 }
 0x234   :  { %v975_v60 = vpop.permute.xlu1 %974 }
 0x27b   :  { %v1313_v15 = vpop.f32.mrf.mxu1 }
 0x27c   :  { %v1642_v16 = vsel %vm1641_vm2, %v1313_v15, -inf }
 0x27d   :  { %1643 = vmax.xlane.f32.xlu0 %v1642_v16  ;;  %v3541_v17 = vpop.f32.mrf.mxu1 }
 0x27f   :  { %v1316_v18 = vpop.f32.mrf.mxu1  ;;  %v1497_v52 = vpop.f32.mrf.mxu0 }
 0x280   :  { %v1654_v53 = vsel %vm1641_vm2, %v1497_v52, -inf }
 0x281   :  { %v3542_v20 = vpop.f32.mrf.mxu1  ;;  %1655 = vmax.xlane.f32.xlu1 %v1654_v53  ;;  %v3565_v62 = vpop.f32.mrf.mxu0 }
 0x283   :  { %v1359_v40 = vpop.f32.mrf.mxu1  ;;  %v1500_v41 = vpop.f32.mrf.mxu0 }
 0x284   :  { %v1645_v21 = vsel %vm1641_vm2, %v1359_v40, -inf }
 0x285   :  { %v3547_v22 = vpop.f32.mrf.mxu1  ;;  %1646 = vmax.xlane.f32.xlu1 %v1645_v21  ;;  %v3566_v24 = vpop.f32.mrf.mxu0 }
 0x287   :  { %v1362_v23 = vpop.f32.mrf.mxu1  ;;  %v4295_v26 = vpop.f32.mrf.mxu0 }
 0x288   :  { %v1660_v28 = vsel %vm1641_vm2, %v4295_v26, -inf }
 0x289   :  { %v3548_v25 = vpop.f32.mrf.mxu1  ;;  %1661 = vmax.xlane.f32.xlu1 %v1660_v28  ;;  %v3577_v33 = vpop.f32.mrf.mxu0 }
 0x28b   :  { %v1405_v32 = vpop.f32.mrf.mxu1  ;;  %v1592_v36 = vpop.f32.mrf.mxu0 }
 0x28c   :  { %v1648_v34 = vsel %vm1641_vm2, %v1405_v32, -inf }
 0x28d   :  { %1649 = vmax.xlane.f32.xlu0 %v1648_v34  ;;  %v3553_v35 = vpop.f32.mrf.mxu1  ;;  %v3578_v38 = vpop.f32.mrf.mxu0 }
 0x28f   :  { %v1408_v37 = vpop.f32.mrf.mxu1 }
 0x291   :  { %v3554_v39 = vpop.f32.mrf.mxu1 }
 0x293   :  { %v1451_v42 = vpop.f32.mrf.mxu1 }
 0x294   :  { %v1651_v43 = vsel %vm1641_vm2, %v1451_v42, -inf }
 0x295   :  { %1652 = vmax.xlane.f32.xlu0 %v1651_v43  ;;  %v3559_v63 = vpop.f32.mrf.mxu1 }
 0x297   :  { %v1454_v1 = vpop.f32.mrf.mxu1 }
 0x299   :  { %v3560_v2 = vpop.f32.mrf.mxu1 }
 0x29a   :  { %986 = vrot.lane.b32.xlu1 %v4278_v6, %s3972_s2 }
 0x29b   :  { %v4301_v11 = vpop.f32.mrf.mxu1 }
 0x29c   :  { %v1657_v44 = vsel %vm1641_vm2, %v4301_v11, -inf }
 0x29d   :  { %1658 = vmax.xlane.f32.xlu0 %v1657_v44  ;;  %v3571_v45 = vpop.f32.mrf.mxu1 }
 0x29f   :  { %v1546_v46 = vpop.f32.mrf.mxu1 }
 0x2a1   :  { %v3572_v47 = vpop.f32.mrf.mxu1 }
 0x2a3   :  { %v4307_v48 = vpop.f32.mrf.mxu1 }
 0x2a4   :  { %v1663_v49 = vsel %vm1641_vm2, %v4307_v48, -inf }
 0x2a5   :  { %1664 = vmax.xlane.f32.xlu0 %v1663_v49  ;;  %v3583_v51 = vpop.f32.mrf.mxu1 }
 0x2a7   :  { %v1638_v54 = vpop.f32.mrf.mxu1 }
 0x2a9   :  { %v3584_v55 = vpop.f32.mrf.mxu1 }
 0x2bb   :  { %980 = vrot.lane.b32.xlu0 %v4278_v6, %s3960_s28 }
 0x306   :  { %v1644_v58 = vpop.xlane.xlu0 %1643 }
 0x307   :  { %v1666_v59 = vsub.f32 %v1313_v15, %v1644_v58 }
 0x309   :  { %v1674_v61 = vmul.f32 1.442695, %v1666_v59 }
 0x30a   :  { %v1656_v3 = vpop.xlane.xlu1 %1655 }
 0x30b   :  { %3810 = vpow2.f32 %v1674_v61  ;;  %v1670_v4 = vsub.f32 %v1497_v52, %v1656_v3 }
 0x30d   :  { %v1682_v5 = vmul.f32 1.442695, %v1670_v4 }
 0x30e   :  { %v1647_v7 = vpop.xlane.xlu1 %1646 }
 0x30f   :  { %3812 = vpow2.f32 %v1682_v5  ;;  %v1667_v8 = vsub.f32 %v1359_v40, %v1647_v7 }
 0x311   :  { %v1676_v9 = vmul.f32 1.442695, %v1667_v8 }
 0x312   :  { %v1662_v22 = vpop.xlane.xlu1 %1661 }
 0x313   :  { %3814 = vpow2.f32 %v1676_v9 }
 0x316   :  { %v1650_v30 = vpop.xlane.xlu0 %1649  ;;  %v987_v23 = vpop.permute.xlu1 %986 }
 0x317   :  { %v1668_v12 = vsub.f32 %v1405_v32, %v1650_v30  ;;  %v1008_v28 = vcombine.low %v975_v60, %v987_v23  ;;  %v1009_v32 = vcombine.high %v975_v60, %v987_v23 }
 0x318   :  { %v4313_v13 = vpop.eup %3810 }
 0x319   :  { %v1678_v14 = vmul.f32 1.442695, %v1668_v12  ;;  %v1690_v16 = vsel %vm1641_vm2, %v4313_v13, 0.0  ;;  %v1016_v37 = vrot.slane %v1008_v28, %v4125_v50  ;;  %v1023_v38 = vrot.slane %v1009_v32, %v4125_v50 }
 0x31a   :  { %1691 = vadd.xlane.f32.xlu1 %v1690_v16  ;;  %v1672_v28 = vsub.f32 %v4295_v26, %v1662_v22 }
 0x31b   :  { %3816 = vpow2.f32 %v1678_v14 }
 0x31c   :  { %v4317_v15 = vpop.eup %3812  ;;  %v1686_v32 = vmul.f32 1.442695, %v1672_v28 }
 0x31d   :  { %v1702_v20 = vsel %vm1641_vm2, %v4317_v15, 0.0 }
 0x31e   :  { %v1653_v17 = vpop.xlane.xlu0 %1652  ;;  %1703 = vadd.xlane.f32.xlu0 %v1702_v20 }
 0x31f   :  { %v1669_v18 = vsub.f32 %v1451_v42, %v1653_v17 }
 0x320   :  { %v4321_v53 = vpop.eup %3814 }
 0x321   :  { %v1680_v52 = vmul.f32 1.442695, %v1669_v18  ;;  %v1693_v40 = vsel %vm1641_vm2, %v4321_v53, 0.0 }
 0x322   :  { %1694 = vadd.xlane.f32.xlu0 %v1693_v40 }
 0x323   :  { %3818 = vpow2.f32 %v1680_v52 }
 0x326   :  { %v1659_v21 = vpop.xlane.xlu0 %1658 }
 0x327   :  { %v1671_v52 = vsub.f32 %v4301_v11, %v1659_v21 }
 0x328   :  { %v4325_v62 = vpop.eup %3816 }
 0x329   :  { %v1696_v41 = vsel %vm1641_vm2, %v4325_v62, 0.0  ;;  %v1684_v23 = vmul.f32 1.442695, %v1671_v52 }
 0x32a   :  { %1697 = vadd.xlane.f32.xlu1 %v1696_v41 }
 0x32b   :  { %3820 = vpow2.f32 %v1684_v23 }
 0x32c   :  { %3822 = vpow2.f32 %v1686_v32 }
 0x32e   :  { %v4329_v24 = vpop.xlane.xlu0 %1664 }
 0x32f   :  { %v1673_v26 = vsub.f32 %v4307_v48, %v4329_v24 }
 0x330   :  { %v4331_v25 = vpop.eup %3818 }
 0x331   :  { %v1699_v33 = vsel %vm1641_vm2, %v4331_v25, 0.0  ;;  %v1688_v22 = vmul.f32 1.442695, %v1673_v26 }
 0x332   :  { %v981_v34 = vpop.permute.xlu0 %980  ;;  %1700 = vadd.xlane.f32.xlu0 %v1699_v33 }
 0x333   :  { %v992_v35 = vcombine.low %v4278_v6, %v981_v34  ;;  %v993_v36 = vcombine.high %v4278_v6, %v981_v34  ;;  %3824 = vpow2.f32 %v1688_v22 }
 0x335   :  { %v1000_v39 = vrot.slane %v992_v35, %v4125_v50  ;;  %v1007_v42 = vrot.slane %v993_v36, %v4125_v50 }
 0x337   :  { %v1024_v43 = vcombine.low %v1000_v39, %v1016_v37  ;;  %v1025_v63 = vcombine.high %v1000_v39, %v1016_v37  ;;  %v1040_v1 = vcombine.low %v1007_v42, %v1023_v38  ;;  %v1041_v2 = vcombine.high %v1007_v42, %v1023_v38 }
 0x338   :  { %v4363_v11 = vpop.eup %3820 }
 0x339   :  { %v1032_v44 = vrot.slane %v1024_v43, %v4128_v57  ;;  %v1039_v45 = vrot.slane %v1025_v63, %v4128_v57  ;;  %v1048_v46 = vrot.slane %v1040_v1, %v4128_v57  ;;  %v1055_v6 = vrot.slane %v1041_v2, %v4128_v57  ;;  %v4367_v33 = vpop.eup %3822 }
 0x33a   :  { %v1705_v21 = vsel %vm1641_vm2, %v4363_v11, 0.0  ;;  %v1708_v34 = vsel %vm1641_vm2, %v4367_v33, 0.0 }
 0x33b   :  { %v1128_v47 = vcombine.low %v1032_v44, %v1039_v45  ;;  %v3321_v49 = vcombine.high %v1032_v44, %v1039_v45  ;;  %v1144_v51 = vcombine.low %v1048_v46, %v1055_v6  ;;  %v3322_v54 = vcombine.high %v1048_v46, %v1055_v6  ;;  %982 = vrot.lane.b32.xlu1 %v4284_v10, %s3960_s28 }
 0x33d   :  { %v1135_v55 = vrot.slane %v1128_v47, %v4125_v50  ;;  %v1143_v58 = vrot.slane %v3321_v49, %v4125_v50  ;;  %v1151_v59 = vrot.slane %v1144_v51, %v4125_v50  ;;  %v1159_v60 = vrot.slane %v3322_v54, %v4125_v50 }
 0x33f   :  { %v1160_v61 = vcombine.low %v1135_v55, %v1143_v58  ;;  %v1176_v3 = vcombine.low %v1151_v59, %v1159_v60  ;;  %v1161_v4 = vcombine.high %v1135_v55, %v1143_v58  ;;  %v1177_v5 = vcombine.high %v1151_v59, %v1159_v60 }
 0x340   :  { %v4375_v35 = vpop.eup %3824 }
 0x341   :  { %v1168_v7 = vrot.slane %v1160_v61, %v4128_v57  ;;  %v1184_v8 = vrot.slane %v1176_v3, %v4128_v57  ;;  %v1175_v9 = vrot.slane %v1161_v4, %v4128_v57  ;;  %v1191_v30 = vrot.slane %v1177_v5, %v4128_v57 }
 0x342   :  { %v1711_v36 = vsel %vm1641_vm2, %v4375_v35, 0.0 }
 0x343   :  { %v1192_v12 = vcombine.low %v1168_v7, %v1184_v8  ;;  %v1193_v14 = vcombine.high %v1168_v7, %v1184_v8  ;;  %v1194_v16 = vcombine.low %v1175_v9, %v1191_v30  ;;  %v1195_v17 = vcombine.high %v1175_v9, %v1191_v30 }
 0x345   :  { %v1264_v18 = vpack.c.bf16 %v1192_v12, %v1192_v12  ;;  %v1265_v20 = vpack.c.bf16 %v1193_v14, %v1193_v14  ;;  %v1266_v63 = vpack.c.bf16 %v1194_v16, %v1194_v16 }
 0x347   :  { %v1743_v40 = vsel %vm1741_vm3, %v1264_v18, 0  ;;  %v1789_v41 = vsel %vm1741_vm3, %v1265_v20, 0  ;;  %v1835_v24 = vsel %vm1741_vm3, %v1266_v63, 0 }
 0x348   :  { %976 = vrot.lane.b32.xlu0 %v4284_v10, %s3973_s18  ;;  %3586 = vmatpush3.bf16.msra.mxu0 %v1743_v40 }
 0x349   :  { %3592 = vmatpush3.bf16.msra.mxu1 %v1789_v41  ;;  %3597 = vmatprep.subr.bf16.mxu0 %v3970_v19 }
 0x34a   :  { %3603 = vmatprep.subr.bf16.mxu1 %v3970_v19 }
 0x35f   :  { %1706 = vadd.xlane.f32.xlu1 %v1705_v21 }
 0x367   :  { %1709 = vadd.xlane.f32.xlu0 %v1708_v34 }
 0x370   :  { %988 = vrot.lane.b32.xlu1 %v4284_v10, %s3972_s2 }
 0x394   :  { %1712 = vadd.xlane.f32.xlu1 %v1711_v36 }
 0x3a3   :  { %v1692_v37 = vpop.xlane.xlu1 %1691 }
 0x3a4   :  { %3826 = vrcp.f32 %v1692_v37 }
 0x3a7   :  { %v1704_v38 = vpop.xlane.xlu0 %1703 }
 0x3ab   :  { %v1695_v39 = vpop.xlane.xlu0 %1694 }
 0x3ac   :  { %3828 = vrcp.f32 %v1695_v39 }
 0x3b1   :  { %v3827_v42 = vpop.eup %3826 }
 0x3b2   :  { %v1722_v43 = vmul.f32 %v3827_v42, %v4313_v13  ;;  %v1267_v13 = vpack.c.bf16 %v1195_v17, %v1195_v17 }
 0x3b3   :  { %v1698_v1 = vpop.xlane.xlu1 %1697 }
 0x3b4   :  { %3830 = vrcp.f32 %v1698_v1  ;;  %v1730_v48 = vpack.c.bf16 %v1722_v43, %v1722_v43  ;;  %v1881_v6 = vsel %vm1741_vm3, %v1267_v13, 0 }
 0x3b6   :  { %3588 = vmatmul.mubr.msk.bf16.vlgmr.msra.gmra.mxu0 %vm1641_vm2, %v1730_v48 }
 0x3b7   :  { %3598 = vmatpush3.bf16.msra.mxu0 %v1835_v24  ;;  %3599 = vmatprep.mubr.msk.bf16.mxu0 %vm3971_vm0, %v3970_v19  ;;  %v983_v58 = vpop.permute.xlu1 %982 }
 0x3b8   :  { %3609 = vmatprep.subr.bf16.mxu0 %v3970_v19  ;;  %v1061_v60 = vcombine.high %v4284_v10, %v983_v58 }
 0x3b9   :  { %v3829_v2 = vpop.eup %3828 }
 0x3ba   :  { %v1723_v45 = vmul.f32 %v3829_v2, %v4321_v53 }
 0x3bb   :  { %v1701_v44 = vpop.xlane.xlu0 %1700 }
 0x3bc   :  { %3832 = vrcp.f32 %v1701_v44  ;;  %v1731_v46 = vpack.c.bf16 %v1723_v45, %v1723_v45 }
 0x3bd   :  { %3834 = vrcp.f32 %v1704_v38 }
 0x3be   :  { %3594 = vmatmul.mubr.msk.bf16.vlgmr.msra.gmra.mxu1 %vm1641_vm2, %v1731_v46 }
 0x3bf   :  { %3604 = vmatpush3.bf16.msra.mxu1 %v1881_v6  ;;  %3605 = vmatprep.mubr.msk.bf16.mxu1 %vm3971_vm0, %v3970_v19  ;;  %v977_v61 = vpop.permute.xlu0 %976 }
 0x3c0   :  { %3615 = vmatprep.subr.bf16.mxu1 %v3970_v19 }
 0x3c1   :  { %v3831_v47 = vpop.eup %3830 }
 0x3c2   :  { %v1724_v49 = vmul.f32 %v3831_v47, %v4325_v62  ;;  %v1060_v62 = vcombine.low %v4284_v10, %v983_v58 }
 0x3c4   :  { %v1732_v51 = vpack.c.bf16 %v1724_v49, %v1724_v49  ;;  %v1068_v7 = vrot.slane %v1060_v62, %v4125_v50 }
 0x3c6   :  { %3600 = vmatmul.mubr.msk.bf16.vlgmr.msra.gmra.mxu0 %vm1641_vm2, %v1732_v51 }
 0x3c7   :  { %3611 = vmatprep.mubr.msk.bf16.mxu0 %vm3971_vm0, %v3970_v19 }
 0x3c9   :  { %v3833_v53 = vpop.eup %3832 }
 0x3ca   :  { %v1725_v54 = vmul.f32 %v3833_v53, %v4331_v25  ;;  %v1075_v25 = vrot.slane %v1061_v60, %v4125_v50  ;;  %v3835_v39 = vpop.eup %3834 }
 0x3cb   :  { %v1726_v6 = vmul.f32 %v3835_v39, %v4317_v15 }
 0x3cc   :  { %v1733_v55 = vpack.c.bf16 %v1725_v54, %v1725_v54 }
 0x3cd   :  { %v1734_v58 = vpack.c.bf16 %v1726_v6, %v1726_v6 }
 0x3ce   :  { %3606 = vmatmul.mubr.msk.bf16.vlgmr.msra.gmra.mxu1 %vm1641_vm2, %v1733_v55 }
 0x3cf   :  { %3617 = vmatprep.mubr.msk.bf16.mxu1 %vm3971_vm0, %v3970_v19 }
 0x3e8   :  { %v1707_v59 = vpop.xlane.xlu1 %1706 }
 0x3e9   :  { %3836 = vrcp.f32 %v1707_v59 }
 0x3ec   :  { %v989_v3 = vpop.permute.xlu1 %988 }
 0x3ed   :  { %v1076_v4 = vcombine.low %v977_v61, %v989_v3  ;;  %v1077_v5 = vcombine.high %v977_v61, %v989_v3 }
 0x3ef   :  { %v1084_v8 = vrot.slane %v1076_v4, %v4125_v50  ;;  %v1091_v9 = vrot.slane %v1077_v5, %v4125_v50 }
 0x3f0   :  { %v1710_v52 = vpop.xlane.xlu0 %1709 }
 0x3f1   :  { %v1092_v30 = vcombine.low %v1068_v7, %v1084_v8  ;;  %v1093_v12 = vcombine.high %v1068_v7, %v1084_v8  ;;  %v1108_v14 = vcombine.low %v1075_v25, %v1091_v9  ;;  %v1109_v16 = vcombine.high %v1075_v25, %v1091_v9 }
 0x3f2   :  { %3838 = vrcp.f32 %v1710_v52 }
 0x3f3   :  { %v1100_v10 = vrot.slane %v1092_v30, %v4128_v57  ;;  %v1107_v17 = vrot.slane %v1093_v12, %v4128_v57  ;;  %v1116_v18 = vrot.slane %v1108_v14, %v4128_v57  ;;  %v1123_v20 = vrot.slane %v1109_v16, %v4128_v57 }
 0x3f5   :  { %v1196_v40 = vcombine.low %v1100_v10, %v1107_v17  ;;  %v3323_v41 = vcombine.high %v1100_v10, %v1107_v17  ;;  %v1212_v23 = vcombine.low %v1116_v18, %v1123_v20  ;;  %v3324_v28 = vcombine.high %v1116_v18, %v1123_v20  ;;  %v3721_v20 = vld [vmem:[#allocation5 + $0x38] sm:$0xff]  }
 0x3f6   :  { %v3837_v48 = vpop.eup %3836 }
 0x3f7   :  { %v1203_v32 = vrot.slane %v1196_v40, %v4125_v50  ;;  %v1211_v21 = vrot.slane %v3323_v41, %v4125_v50  ;;  %v1219_v34 = vrot.slane %v1212_v23, %v4125_v50  ;;  %v1227_v26 = vrot.slane %v3324_v28, %v4125_v50 }
 0x3f8   :  { %v1727_v47 = vmul.f32 %v3837_v48, %v4363_v11 }
 0x3f9   :  { %v1228_v22 = vcombine.low %v1203_v32, %v1211_v21  ;;  %v1244_v36 = vcombine.low %v1219_v34, %v1227_v26  ;;  %v1229_v37 = vcombine.high %v1203_v32, %v1211_v21  ;;  %v1245_v38 = vcombine.high %v1219_v34, %v1227_v26  ;;  %v3723_v32 = vld [vmem:[#allocation5 + $0x28] sm:$0xff]  }
 0x3fa   :  { %v1735_v59 = vpack.c.bf16 %v1727_v47, %v1727_v47  ;;  %v3725_v47 = vld [vmem:[#allocation5 + $0x18] sm:$0xff]  }
 0x3fb   :  { %v1236_v42 = vrot.slane %v1228_v22, %v4128_v57  ;;  %v1252_v43 = vrot.slane %v1244_v36, %v4128_v57  ;;  %v1243_v63 = vrot.slane %v1229_v37, %v4128_v57  ;;  %v1259_v1 = vrot.slane %v1245_v38, %v4128_v57 }
 0x3fd   :  { %v1260_v24 = vcombine.low %v1236_v42, %v1252_v43  ;;  %v1261_v2 = vcombine.high %v1236_v42, %v1252_v43  ;;  %v1262_v44 = vcombine.low %v1243_v63, %v1259_v1  ;;  %v1263_v45 = vcombine.high %v1243_v63, %v1259_v1  ;;  %v3724_v63 = vld [vmem:[#allocation5 + $0x20] sm:$0xff]  }
 0x3ff   :  { %v1268_v13 = vpack.c.bf16 %v1260_v24, %v1260_v24  ;;  %v1269_v46 = vpack.c.bf16 %v1261_v2, %v1261_v2  ;;  %v1270_v53 = vpack.c.bf16 %v1262_v44, %v1262_v44  ;;  %v1271_v54 = vpack.c.bf16 %v1263_v45, %v1263_v45  ;;  %v3839_v55 = vpop.eup %3838 }
 0x400   :  { %v1728_v62 = vmul.f32 %v3839_v55, %v4367_v33 }
 0x401   :  { %v1927_v49 = vsel %vm1741_vm3, %v1268_v13, 0  ;;  %v1973_v51 = vsel %vm1741_vm3, %v1269_v46, 0  ;;  %v2019_v15 = vsel %vm1741_vm3, %v1270_v53, 0  ;;  %v2065_v11 = vsel %vm1741_vm3, %v1271_v54, 0 }
 0x402   :  { %3610 = vmatpush3.bf16.msra.mxu0 %v1927_v49  ;;  %3616 = vmatpush3.bf16.msra.mxu1 %v1973_v51  ;;  %v1736_v60 = vpack.c.bf16 %v1728_v62, %v1728_v62 }
 0x403   :  { %3621 = vmatprep.subr.bf16.mxu0 %v3970_v19  ;;  %3627 = vmatprep.subr.bf16.mxu1 %v3970_v19 }
 0x405   :  { %3612 = vmatmul.mubr.msk.bf16.vlgmr.msra.gmra.mxu0 %vm1641_vm2, %v1734_v58  ;;  %3618 = vmatmul.mubr.msk.bf16.vlgmr.msra.gmra.mxu1 %vm1641_vm2, %v1735_v59 }
 0x406   :  { %3622 = vmatpush3.bf16.msra.mxu0 %v2019_v15  ;;  %3628 = vmatpush3.bf16.msra.mxu1 %v2065_v11  ;;  %v3726_v11 = vld [vmem:[#allocation5 + $0x10] sm:$0xff]  }
 0x407   :  { %3623 = vmatprep.mubr.msk.bf16.mxu0 %vm3971_vm0, %v3970_v19  ;;  %3629 = vmatprep.mubr.msk.bf16.mxu1 %vm3971_vm0, %v3970_v19 }
 0x408   :  { %3633 = vmatprep.subr.bf16.mxu0 %v3970_v19 }
 0x40d   :  { %3624 = vmatmul.mubr.msk.bf16.vlgmr.msra.gmra.mxu0 %vm1641_vm2, %v1736_v60 }
 0x40e   :  { %3649 = vmatprep.mubr.msk.bf16.mxu0 %vm3971_vm0, %v3970_v19  ;;  %3634 = vmatpush3.bf16.msra.mxu0 %v3721_v20 }
 0x40f   :  { %3635 = vmatprep.subr.bf16.mxu0 %v3970_v19 }
 0x41d   :  { %v1713_v61 = vpop.xlane.xlu1 %1712 }
 0x41e   :  { %3840 = vrcp.f32 %v1713_v61 }
 0x42b   :  { %v3841_v3 = vpop.eup %3840 }
 0x42c   :  { %v1729_v4 = vmul.f32 %v3841_v3, %v4375_v35  ;;  %v3722_v35 = vld [vmem:[#allocation5 + $0x30] sm:$0xff]  }
 0x42d   :  { %3636 = vmatpush3.bf16.msra.mxu0 %v3722_v35 }
 0x42e   :  { %v1737_v5 = vpack.c.bf16 %v1729_v4, %v1729_v4  ;;  %3637 = vmatprep.subr.bf16.mxu0 %v3970_v19 }
 0x430   :  { %3630 = vmatmul.mubr.msk.bf16.vlgmr.msra.gmra.mxu1 %vm1641_vm2, %v1737_v5 }
 0x431   :  { %2814 = vmatprep.mubr.bf16.mxu1 %v3969_v0  ;;  %3638 = vmatpush3.bf16.msra.mxu0 %v3723_v32 }
 0x432   :  { %3639 = vmatprep.subr.bf16.mxu0 %v3970_v19 }
 0x435   :  { %3640 = vmatpush3.bf16.msra.mxu0 %v3724_v63 }
 0x436   :  { %3641 = vmatprep.subr.bf16.mxu0 %v3970_v19 }
 0x439   :  { %3642 = vmatpush3.bf16.msra.mxu0 %v3725_v47 }
 0x43a   :  { %3643 = vmatprep.subr.bf16.mxu0 %v3970_v19 }
 0x43d   :  { %3644 = vmatpush3.bf16.msra.mxu0 %v3726_v11 }
 0x43e   :  { %3645 = vmatprep.subr.bf16.mxu0 %v3970_v19 }
 0x476   :  { %v1779_v33 = vpop.f32.mrf.mxu0 }
 0x478   :  { %v3589_v7 = vpop.f32.mrf.mxu0 }
 0x47a   :  { %v1782_v25 = vpop.f32.mrf.mxu0 }
 0x47c   :  { %v3590_v8 = vpop.f32.mrf.mxu0 }
 0x47e   :  { %v1825_v9 = vpop.f32.mrf.mxu1 }
 0x480   :  { %v3595_v30 = vpop.f32.mrf.mxu1 }
 0x482   :  { %v1828_v12 = vpop.f32.mrf.mxu1 }
 0x484   :  { %v3596_v16 = vpop.f32.mrf.mxu1 }
 0x486   :  { %v1871_v14 = vpop.f32.mrf.mxu0 }
 0x487   :  { %v2107_v10 = vcombine.low %v1779_v33, %v1871_v14  ;;  %v2108_v17 = vcombine.high %v1779_v33, %v1871_v14 }
 0x488   :  { %v3601_v18 = vpop.f32.mrf.mxu0 }
 0x489   :  { %v2115_v34 = vrot.slane %v2107_v10, %v4125_v50  ;;  %v2122_v26 = vrot.slane %v2108_v17, %v4125_v50 }
 0x48a   :  { %v1874_v52 = vpop.f32.mrf.mxu0 }
 0x48c   :  { %v3602_v40 = vpop.f32.mrf.mxu0 }
 0x48e   :  { %v1917_v41 = vpop.f32.mrf.mxu1 }
 0x48f   :  { %v2123_v23 = vcombine.low %v1825_v9, %v1917_v41  ;;  %v2124_v28 = vcombine.high %v1825_v9, %v1917_v41 }
 0x490   :  { %v3607_v21 = vpop.f32.mrf.mxu1 }
 0x491   :  { %v2131_v22 = vrot.slane %v2123_v23, %v4125_v50  ;;  %v2138_v36 = vrot.slane %v2124_v28, %v4125_v50 }
 0x492   :  { %v1920_v37 = vpop.f32.mrf.mxu1 }
 0x493   :  { %v2139_v38 = vcombine.low %v2115_v34, %v2131_v22  ;;  %v2140_v39 = vcombine.high %v2115_v34, %v2131_v22  ;;  %v2155_v42 = vcombine.low %v2122_v26, %v2138_v36  ;;  %v2156_v43 = vcombine.high %v2122_v26, %v2138_v36 }
 0x494   :  { %v3608_v1 = vpop.f32.mrf.mxu1 }
 0x495   :  { %v2147_v48 = vrot.slane %v2139_v38, %v4128_v57  ;;  %v2154_v24 = vrot.slane %v2140_v39, %v4128_v57  ;;  %v2163_v2 = vrot.slane %v2155_v42, %v4128_v57  ;;  %v2170_v44 = vrot.slane %v2156_v43, %v4128_v57 }
 0x497   :  { %v2243_v45 = vcombine.low %v2147_v48, %v2154_v24  ;;  %v3341_v13 = vcombine.high %v2147_v48, %v2154_v24  ;;  %v2259_v46 = vcombine.low %v2163_v2, %v2170_v44  ;;  %v3342_v6 = vcombine.high %v2163_v2, %v2170_v44 }
 0x499   :  { %v2250_v49 = vrot.slane %v2243_v45, %v4125_v50  ;;  %v2258_v51 = vrot.slane %v3341_v13, %v4125_v50  ;;  %v2266_v53 = vrot.slane %v2259_v46, %v4125_v50  ;;  %v2274_v54 = vrot.slane %v3342_v6, %v4125_v50  ;;  %v3727_v46 = vld [vmem:[#allocation5 + $0x8] sm:$0xff]  }
 0x49a   :  { %3646 = vmatpush3.bf16.msra.mxu0 %v3727_v46 }
 0x49b   :  { %v2276_v55 = vcombine.high %v2250_v49, %v2258_v51  ;;  %v2292_v58 = vcombine.high %v2266_v53, %v2274_v54  ;;  %v2275_v59 = vcombine.low %v2250_v49, %v2258_v51  ;;  %v2291_v15 = vcombine.low %v2266_v53, %v2274_v54  ;;  %3647 = vmatprep.subr.bf16.mxu0 %v3970_v19 }
 0x49d   :  { %v4457_v62 = vrot.slane %v2276_v55, %v4128_v57  ;;  %v4460_v60 = vrot.slane %v2292_v58, %v4128_v57  ;;  %v4463_v61 = vrot.slane %v2275_v59, %v4128_v57  ;;  %v4466_v3 = vrot.slane %v2291_v15, %v4128_v57 }
 0x49f   :  { %v2309_v4 = vcombine.low %v4457_v62, %v4460_v60  ;;  %v2307_v5 = vcombine.low %v4463_v61, %v4466_v3  ;;  %v2308_v33 = vcombine.high %v4463_v61, %v4466_v3  ;;  %v2310_v7 = vcombine.high %v4457_v62, %v4460_v60  ;;  %v3345_v61 = vld [vmem:[%s4562_s4] ss:$0 sm:$0xff] }
 0x4a0   :  { %v3850_v3 = vld [vmem:[%s4558_s0] sm:$0xff]  }
 0x4c5   :  { %v1963_v25 = vpop.f32.mrf.mxu0  ;;  %v2009_v8 = vpop.f32.mrf.mxu1 }
 0x4c7   :  { %v3613_v9 = vpop.f32.mrf.mxu0  ;;  %v3619_v30 = vpop.f32.mrf.mxu1 }
 0x4c9   :  { %v1966_v12 = vpop.f32.mrf.mxu0  ;;  %v2012_v14 = vpop.f32.mrf.mxu1 }
 0x4cb   :  { %v3614_v16 = vpop.f32.mrf.mxu0  ;;  %v3620_v10 = vpop.f32.mrf.mxu1 }
 0x4cd   :  { %v2055_v17 = vpop.f32.mrf.mxu0 }
 0x4ce   :  { %v2175_v35 = vcombine.low %v1963_v25, %v2055_v17  ;;  %v2176_v40 = vcombine.high %v1963_v25, %v2055_v17 }
 0x4cf   :  { %v3625_v18 = vpop.f32.mrf.mxu0 }
 0x4d0   :  { %v2183_v21 = vrot.slane %v2175_v35, %v4125_v50  ;;  %v2190_v34 = vrot.slane %v2176_v40, %v4125_v50 }
 0x4d1   :  { %v2058_v20 = vpop.f32.mrf.mxu0 }
 0x4d3   :  { %v3626_v52 = vpop.f32.mrf.mxu0 }
 0x4f0   :  { %v2101_v41 = vpop.f32.mrf.mxu1 }
 0x4f1   :  { %v2191_v23 = vcombine.low %v2009_v8, %v2101_v41  ;;  %v2192_v28 = vcombine.high %v2009_v8, %v2101_v41  ;;  %v3728_v8 = vld [vmem:[#allocation5] sm:$0xff]  }
 0x4f2   :  { %v3631_v32 = vpop.f32.mrf.mxu1  ;;  %3648 = vmatpush3.bf16.msra.mxu0 %v3728_v8  ;;  %v3755_v8 = vld [vmem:[#allocation7 + $0x64] ss:$16 sps:$4 sm:$0xff]  }
 0x4f3   :  { %v2199_v26 = vrot.slane %v2191_v23, %v4125_v50  ;;  %v2206_v22 = vrot.slane %v2192_v28, %v4125_v50 }
 0x4f4   :  { %v2104_v36 = vpop.f32.mrf.mxu1 }
 0x4f5   :  { %v2207_v37 = vcombine.low %v2183_v21, %v2199_v26  ;;  %v2208_v38 = vcombine.high %v2183_v21, %v2199_v26  ;;  %v2223_v39 = vcombine.low %v2190_v34, %v2206_v22  ;;  %v2224_v42 = vcombine.high %v2190_v34, %v2206_v22 }
 0x4f6   :  { %v3632_v43 = vpop.f32.mrf.mxu1  ;;  %v104_v22 = vunpack.c.h.bf16 %v3850_v3 }
 0x4f7   :  { %v2215_v63 = vrot.slane %v2207_v37, %v4128_v57  ;;  %v2222_v1 = vrot.slane %v2208_v38, %v4128_v57  ;;  %v2231_v48 = vrot.slane %v2223_v39, %v4128_v57  ;;  %v2238_v24 = vrot.slane %v2224_v42, %v4128_v57  ;;  %v3731_v42 = vld [vmem:[#allocation7 + $0xe4] ss:$16 sps:$4 sm:$0xff]   ;;  %v3732_v43 = vld [vmem:[#allocation7 + $0xe8] ss:$16 sps:$4 sm:$0xff]  }
 0x4f8   :  { %2782 = vmatprep.subr.bf16.mxu1 %v3731_v42  ;;  %v3781_v42 = vld [vmem:[#allocation8 + $0x70] sm:$0xff]  }
 0x4f9   :  { %v2311_v2 = vcombine.low %v2215_v63, %v2222_v1  ;;  %v3343_v44 = vcombine.high %v2215_v63, %v2222_v1  ;;  %v2327_v45 = vcombine.low %v2231_v48, %v2238_v24  ;;  %v3344_v13 = vcombine.high %v2231_v48, %v2238_v24  ;;  %v3734_v63 = vld [vmem:[#allocation7 + $0xec] ss:$16 sps:$4 sm:$0xff]  }
 0x4fa   :  { %2825 = vmatprep.subr.bf16.mxu0 %v3734_v63  ;;  %v3783_v63 = vld [vmem:[#allocation8 + $0x30] sm:$0xff]  }
 0x4fb   :  { %v2318_v6 = vrot.slane %v2311_v2, %v4125_v50  ;;  %v2326_v47 = vrot.slane %v3343_v44, %v4125_v50  ;;  %v2334_v49 = vrot.slane %v2327_v45, %v4125_v50  ;;  %v2342_v51 = vrot.slane %v3344_v13, %v4125_v50 }
 0x4fd   :  { %v2344_v53 = vcombine.high %v2318_v6, %v2326_v47  ;;  %v2360_v54 = vcombine.high %v2334_v49, %v2342_v51  ;;  %v2343_v55 = vcombine.low %v2318_v6, %v2326_v47  ;;  %v2359_v58 = vcombine.low %v2334_v49, %v2342_v51  ;;  %v3735_v6 = vld [vmem:[#allocation7 + $0xc0] ss:$16 sps:$4 sm:$0xff]   ;;  %v3737_v47 = vld [vmem:[#allocation7 + $0xc4] ss:$16 sps:$4 sm:$0xff]   ;;  %v3738_v49 = vld [vmem:[#allocation7 + $0xc8] ss:$16 sps:$4 sm:$0xff]  }
 0x4fe   :  { %v3740_v51 = vld [vmem:[#allocation7 + $0xcc] ss:$16 sps:$4 sm:$0xff]  }
 0x4ff   :  { %v2358_v59 = vrot.slane %v2344_v53, %v4128_v57  ;;  %v2374_v15 = vrot.slane %v2360_v54, %v4128_v57  ;;  %v2351_v11 = vrot.slane %v2343_v55, %v4128_v57  ;;  %v2367_v25 = vrot.slane %v2359_v58, %v4128_v57  ;;  %v3741_v53 = vld [vmem:[#allocation7 + $0xa0] ss:$16 sps:$4 sm:$0xff]   ;;  %v3743_v54 = vld [vmem:[#allocation7 + $0xa4] ss:$16 sps:$4 sm:$0xff]   ;;  %v3744_v55 = vld [vmem:[#allocation7 + $0xa8] ss:$16 sps:$4 sm:$0xff]  }
 0x500   :  { %v3746_v58 = vld [vmem:[#allocation7 + $0xac] ss:$16 sps:$4 sm:$0xff]  }
 0x501   :  { %v2377_v9 = vcombine.low %v2358_v59, %v2374_v15  ;;  %v2376_v30 = vcombine.high %v2351_v11, %v2367_v25  ;;  %v2375_v12 = vcombine.low %v2351_v11, %v2367_v25  ;;  %v2378_v16 = vcombine.high %v2358_v59, %v2374_v15  ;;  %v3749_v59 = vld [vmem:[#allocation7 + $0x84] ss:$16 sps:$4 sm:$0xff]   ;;  %v3752_v15 = vld [vmem:[#allocation7 + $0x8c] ss:$16 sps:$4 sm:$0xff]   ;;  %v3747_v11 = vld [vmem:[#allocation7 + $0x80] ss:$16 sps:$4 sm:$0xff]  }
 0x502   :  { %v3750_v25 = vld [vmem:[#allocation7 + $0x88] ss:$16 sps:$4 sm:$0xff]  }
 0x503   :  { %v3678_v50 = vpack.i.bf16 %v2377_v9, %v2309_v4  ;;  %v3673_v14 = vpack.i.bf16 %v2376_v30, %v2308_v33  ;;  %v3683_v19 = vpack.i.bf16 %v2378_v16, %v2310_v7  ;;  %v3758_v9 = vld [vmem:[#allocation7 + $0x6c] ss:$16 sps:$4 sm:$0xff]   ;;  %v3753_v30 = vld [vmem:[#allocation7 + $0x60] ss:$16 sps:$4 sm:$0xff]  }
 0x504   :  { %v3759_v16 = vld [vmem:[#allocation7 + $0x40] ss:$16 sps:$4 sm:$0xff]  }
 0x505   :  { %3679 = vrot.lane.b32.xlu1 %v3678_v50, %s3960_s28  ;;  %3674 = vrot.lane.b32.xlu0 %v3673_v14, %s3972_s2  ;;  %v3761_v50 = vld [vmem:[#allocation7 + $0x44] ss:$16 sps:$4 sm:$0xff]   ;;  %v3764_v14 = vld [vmem:[#allocation7 + $0x4c] ss:$16 sps:$4 sm:$0xff]  }
 0x509   :  { %3684 = vrot.lane.b32.xlu0 %v3683_v19, %s3973_s18  ;;  %v3762_v19 = vld [vmem:[#allocation7 + $0x48] ss:$16 sps:$4 sm:$0xff]  }
 0x577   :  { %v3680_v10 = vpop.permute.xlu1 %3679  ;;  %v3675_v57 = vpop.permute.xlu0 %3674 }
 0x578   :  { %v3677_v17 = vunpack.i.h.bf16 %v3675_v57  ;;  %v3676_v18 = vunpack.i.l.bf16 %v3675_v57  ;;  %v3682_v20 = vunpack.i.h.bf16 %v3680_v10  ;;  %v3681_v52 = vunpack.i.l.bf16 %v3680_v10  ;;  %v3767_v10 = vld [vmem:[#allocation7 + $0x24] ss:$16 sps:$4 sm:$0xff]   ;;  %v3770_v57 = vld [vmem:[#allocation7 + $0x2c] ss:$16 sps:$4 sm:$0xff]  }
 0x57a   :  { %v2403_v4 = vsel %vm1272_vm1, %v2307_v5, %v3676_v18  ;;  %v2404_v33 = vsel %vm1272_vm1, %v2375_v12, %v3677_v17  ;;  %v103_v5 = vunpack.c.l.bf16 %v3850_v3  ;;  %v3756_v12 = vld [vmem:[#allocation7 + $0x68] ss:$16 sps:$4 sm:$0xff]   ;;  %v3765_v17 = vld [vmem:[#allocation7 + $0x20] ss:$16 sps:$4 sm:$0xff]  }
 0x57b   :  { %v3685_v35 = vpop.permute.xlu0 %3684  ;;  %v2406_v7 = vsel %vm2405_vm4, %v2403_v4, %v3681_v52  ;;  %v2407_v40 = vsel %vm2405_vm4, %v2404_v33, %v3682_v20  ;;  %v3768_v18 = vld [vmem:[#allocation7 + $0x28] ss:$16 sps:$4 sm:$0xff]   ;;  %v3773_v20 = vld [vmem:[#allocation7 + $0x4] ss:$16 sps:$4 sm:$0xff]   ;;  %v3776_v52 = vld [vmem:[#allocation7 + $0xc] ss:$16 sps:$4 sm:$0xff]  }
 0x57c   :  { %v3687_v62 = vunpack.i.h.bf16 %v3685_v35  ;;  %v3686_v60 = vunpack.i.l.bf16 %v3685_v35  ;;  %v3771_v4 = vld [vmem:[#allocation7] ss:$16 sps:$4 sm:$0xff]   ;;  %v3774_v33 = vld [vmem:[#allocation7 + $0x8] ss:$16 sps:$4 sm:$0xff]  }
 0x57d   :  { %v3777_v35 = vld [vmem:[#allocation8 + $0x78] sm:$0xff]  }
 0x57e   :  { %v2409_v41 = vsel %vm2408_vm5, %v2406_v7, %v3686_v60  ;;  %v2410_v23 = vsel %vm2408_vm5, %v2407_v40, %v3687_v62  ;;  %v3778_v62 = vld [vmem:[#allocation8 + $0xf8] sm:$0xff]  }
 0x57f   :  { %v2411_v28 = vpack.c.bf16 %v2410_v23, %v2409_v41 }
 0x581   :  { %3650 = vmatmul.mubr.bf16.vlgmr.msra.gmra.mxu0 %v2411_v28 }
 0x582   :  { %2857 = vmatprep.mubr.bf16.mxu0 %v3969_v0  ;;  %v3729_v0 = vld [vmem:[#allocation7 + $0xe0] ss:$16 sps:$4 sm:$0xff]   ;;  %2826 = vmatpush1.bf16.msra.mxu0 %v3732_v43 }
 0x583   :  { %2783 = vmatpush1.bf16.msra.mxu1 %v3729_v0  ;;  %2827 = vmatprep.subr.bf16.mxu0 %v3740_v51  ;;  %v3782_v43 = vld [vmem:[#allocation8 + $0xf0] sm:$0xff]   ;;  %v3795_v51 = vld [vmem:[#allocation8 + $0x18] sm:$0xff]  }
 0x584   :  { %2784 = vmatprep.subr.bf16.mxu1 %v3737_v47  ;;  %v3793_v47 = vld [vmem:[#allocation8 + $0x58] sm:$0xff]  }
 0x586   :  { %2828 = vmatpush1.bf16.msra.mxu0 %v3738_v49  ;;  %v3794_v49 = vld [vmem:[#allocation8 + $0xd8] sm:$0xff]  }
 0x587   :  { %2785 = vmatpush1.bf16.msra.mxu1 %v3735_v6  ;;  %2829 = vmatprep.subr.bf16.mxu0 %v3746_v58  ;;  %v3792_v6 = vld [vmem:[#allocation8 + $0xa0] sm:$0xff]   ;;  %v3799_v58 = vld [vmem:[#allocation8 + $0x10] sm:$0xff]  }
 0x588   :  { %2786 = vmatprep.subr.bf16.mxu1 %v3743_v54  ;;  %v3797_v54 = vld [vmem:[#allocation8 + $0x50] sm:$0xff]  }
 0x58a   :  { %2830 = vmatpush1.bf16.msra.mxu0 %v3744_v55  ;;  %v3798_v55 = vld [vmem:[#allocation8 + $0xd0] sm:$0xff]  }
 0x58b   :  { %2787 = vmatpush1.bf16.msra.mxu1 %v3741_v53  ;;  %2831 = vmatprep.subr.bf16.mxu0 %v3752_v15  ;;  %v3796_v53 = vld [vmem:[#allocation8 + $0x98] sm:$0xff]   ;;  %v3801_v15 = vld [vmem:[#allocation8 + $0x48] sm:$0xff]  }
 0x58c   :  { %2788 = vmatprep.subr.bf16.mxu1 %v3749_v59  ;;  %v3800_v59 = vld [vmem:[#allocation8 + $0x90] sm:$0xff]  }
 0x58e   :  { %2832 = vmatpush1.bf16.msra.mxu0 %v3750_v25  ;;  %v3803_v25 = vld [vmem:[#allocation8 + $0x8] sm:$0xff]  }
 0x58f   :  { %2789 = vmatpush1.bf16.msra.mxu1 %v3747_v11  ;;  %2833 = vmatprep.subr.bf16.mxu0 %v3758_v9  ;;  %v3802_v11 = vld [vmem:[#allocation8 + $0xc8] sm:$0xff]   ;;  %v3805_v9 = vld [vmem:[#allocation8 + $0x40] sm:$0xff]  }
 0x590   :  { %2790 = vmatprep.subr.bf16.mxu1 %v3755_v8  ;;  %v3804_v8 = vld [vmem:[#allocation8 + $0x88] sm:$0xff]  }
 0x592   :  { %2834 = vmatpush1.bf16.msra.mxu0 %v3756_v12  ;;  %v3807_v12 = vld [vmem:[#allocation8] sm:$0xff]  }
 0x593   :  { %2791 = vmatpush1.bf16.msra.mxu1 %v3753_v30  ;;  %2835 = vmatprep.subr.bf16.mxu0 %v3764_v14  ;;  %v3806_v30 = vld [vmem:[#allocation8 + $0xc0] sm:$0xff]   ;;  %v2616_v14 = vsub.s32 3, %v4079_v27 }
 0x594   :  { %2792 = vmatprep.subr.bf16.mxu1 %v3761_v50  ;;  %v3808_v50 = vld [vmem:[#allocation8 + $0x80] sm:$0xff]  }
 0x596   :  { %2836 = vmatpush1.bf16.msra.mxu0 %v3762_v19 }
 0x597   :  { %2793 = vmatpush1.bf16.msra.mxu1 %v3759_v16  ;;  %2837 = vmatprep.subr.bf16.mxu0 %v3770_v57  ;;  %v2600_v16 = vld [vmem:[%s4566_s8] sm:$0xf] }
 0x598   :  { %2794 = vmatprep.subr.bf16.mxu1 %v3767_v10  ;;  %v2609_v57 = vrot.slane %v2600_v16, %v145_v29 }
 0x59a   :  { %2838 = vmatpush1.bf16.msra.mxu0 %v3768_v18  ;;  %v2605_v18 = vrot.slane %v2600_v16, %v141_v31 }
 0x59b   :  { %2795 = vmatpush1.bf16.msra.mxu1 %v3765_v17  ;;  %2839 = vmatprep.subr.bf16.mxu0 %v3776_v52  ;;  %v2617_v17 = vrot.slane %v2600_v16, %v2616_v14 }
 0x59c   :  { %2796 = vmatprep.subr.bf16.mxu1 %v3773_v20  ;;  %v2613_v20 = vrot.slane %v2600_v16, %v149_v56 }
 0x59e   :  { %2840 = vmatpush1.bf16.msra.mxu0 %v3774_v33 }
 0x59f   :  { %2797 = vmatpush1.bf16.msra.mxu1 %v3771_v4  ;;  %3495 = vmatprep.subr.bf16.mxu0 %v3778_v62 }
 0x5a0   :  { %3473 = vmatprep.subr.bf16.mxu1 %v3777_v35 }
 0x641   :  { %v2517_v32 = vpop.f32.mrf.mxu0 }
 0x642   :  { %v2518_v21 = vadd.f32 %v3345_v61, %v2517_v32 }
 0x643   :  { %v3651_v34 = vpop.f32.mrf.mxu0 }
 0x644   :  { %v2524_v26 = vadd.f32 %v2518_v21, %v103_v5  ;;  %v3354_v5 = vld [vmem:[%s4563_s5] ss:$0 sm:$0xff] }
 0x645   :  { %v2520_v36 = vpop.f32.mrf.mxu0 }
 0x646   :  { %v2521_v37 = vadd.f32 %v3345_v61, %v2520_v36  ;;  %2528 = vadd.xlane.f32.xlu1 %v2524_v26 }
 0x647   :  { %v3652_v38 = vpop.f32.mrf.mxu0 }
 0x648   :  { %v2525_v39 = vadd.f32 %v2521_v37, %v104_v22  ;;  %v3779_v38 = vld [vmem:[#allocation8 + $0x38] sm:$0xff]  }
 0x64a   :  { %2530 = vadd.xlane.f32.xlu0 %v2525_v39 }
 0x6cf   :  { %v2529_v1 = vpop.xlane.xlu1 %2528 }
 0x6d0   :  { %v2533_v48 = vmul.f32 0.0078125, %v2529_v1  ;;  %v3784_v1 = vld [vmem:[#allocation8 + $0xb0] sm:$0xff]  }
 0x6d2   :  { %v4512_v24 = vsub.f32 %v2524_v26, %v2533_v48  ;;  %v3355_v26 = vld [vmem:[%s4564_s6] ss:$0 sm:$0xff]  ;;  %v3785_v48 = vld [vmem:[#allocation8 + $0x68] sm:$0xff]  }
 0x6d3   :  { %v2531_v2 = vpop.xlane.xlu0 %2530 }
 0x6d4   :  { %v2534_v44 = vmul.f32 0.0078125, %v2531_v2  ;;  %v2537_v45 = vmul.f32 %v4512_v24, %v4512_v24  ;;  %v3787_v2 = vld [vmem:[#allocation8 + $0x28] sm:$0xff]  }
 0x6d6   :  { %v4516_v13 = vsub.f32 %v2525_v39, %v2534_v44  ;;  %2539 = vadd.xlane.f32.xlu0 %v2537_v45  ;;  %v3780_v39 = vld [vmem:[#allocation8 + $0xb8] sm:$0xff]   ;;  %v3788_v44 = vld [vmem:[#allocation8 + $0xa8] sm:$0xff]   ;;  %v3789_v45 = vld [vmem:[#allocation8 + $0x60] sm:$0xff]  }
 0x6d8   :  { %v2538_v46 = vmul.f32 %v4516_v13, %v4516_v13 }
 0x6da   :  { %2541 = vadd.xlane.f32.xlu1 %v2538_v46  ;;  %v3791_v46 = vld [vmem:[#allocation8 + $0x20] sm:$0xff]  }
 0x75f   :  { %v2540_v60 = vpop.xlane.xlu0 %2539 }
 0x760   :  { %v2543_v7 = vmul.f32 0.0078125, %v2540_v60 }
 0x762   :  { %v2545_v40 = vadd.f32 1e-05, %v2543_v7 }
 0x763   :  { %v2542_v41 = vpop.xlane.xlu1 %2541 }
 0x764   :  { %3842 = vrsqrt.f32 %v2545_v40  ;;  %v2544_v23 = vmul.f32 0.0078125, %v2542_v41 }
 0x766   :  { %v2546_v28 = vadd.f32 1e-05, %v2544_v23 }
 0x768   :  { %3844 = vrsqrt.f32 %v2546_v28 }
 0x771   :  { %v3843_v61 = vpop.eup %3842 }
 0x772   :  { %v2549_v3 = vmul.f32 %v3843_v61, %v4512_v24  ;;  %v3786_v24 = vld [vmem:[#allocation8 + $0xe8] sm:$0xff]  }
 0x774   :  { %v2557_v34 = vmul.f32 %v3354_v5, %v2549_v3 }
 0x775   :  { %v3845_v32 = vpop.eup %3844 }
 0x776   :  { %v2550_v21 = vmul.f32 %v3845_v32, %v4516_v13  ;;  %v4528_v36 = vadd.f32 %v3355_v26, %v2557_v34  ;;  %v3790_v13 = vld [vmem:[#allocation8 + $0xe0] sm:$0xff]  }
 0x778   :  { %v2558_v22 = vmul.f32 %v3354_v5, %v2550_v21 }
 0x77a   :  { %v4530_v37 = vadd.f32 %v3355_v26, %v2558_v22 }
 0x77c   :  { %v2567_v0 = vpack.c.bf16 %v4530_v37, %v4528_v36 }
 0x77e   :  { %2815 = vmatmul.mubr.bf16.vlgmr.msra.gmra.mxu1 %v2567_v0  ;;  %2858 = vmatmul.mubr.bf16.vlgmr.msra.gmra.mxu0 %v2567_v0 }
 0x77f   :  { %3474 = vmatpush3.bf16.msra.mxu1 %v3779_v38  ;;  %3496 = vmatpush3.bf16.msra.mxu0 %v3780_v39 }
 0x780   :  { %3475 = vmatprep.subr.bf16.mxu1 %v3781_v42  ;;  %3497 = vmatprep.subr.bf16.mxu0 %v3782_v43 }
 0x783   :  { %3476 = vmatpush3.bf16.msra.mxu1 %v3783_v63  ;;  %3498 = vmatpush3.bf16.msra.mxu0 %v3784_v1  ;;  %v3388_v63 = vld [vmem:[%s4568_s10] ss:$0 sm:$0xff] }
 0x784   :  { %3477 = vmatprep.subr.bf16.mxu1 %v3785_v48  ;;  %3499 = vmatprep.subr.bf16.mxu0 %v3786_v24 }
 0x787   :  { %3478 = vmatpush3.bf16.msra.mxu1 %v3787_v2  ;;  %3500 = vmatpush3.bf16.msra.mxu0 %v3788_v44 }
 0x788   :  { %3479 = vmatprep.subr.bf16.mxu1 %v3789_v45  ;;  %3501 = vmatprep.subr.bf16.mxu0 %v3790_v13 }
 0x78b   :  { %3480 = vmatpush3.bf16.msra.mxu1 %v3791_v46  ;;  %3502 = vmatpush3.bf16.msra.mxu0 %v3792_v6 }
 0x78c   :  { %3481 = vmatprep.subr.bf16.mxu1 %v3793_v47  ;;  %3503 = vmatprep.subr.bf16.mxu0 %v3794_v49 }
 0x78f   :  { %3482 = vmatpush3.bf16.msra.mxu1 %v3795_v51  ;;  %3504 = vmatpush3.bf16.msra.mxu0 %v3796_v53 }
 0x790   :  { %3483 = vmatprep.subr.bf16.mxu1 %v3797_v54  ;;  %3505 = vmatprep.subr.bf16.mxu0 %v3798_v55 }
 0x793   :  { %3484 = vmatpush3.bf16.msra.mxu1 %v3799_v58  ;;  %3506 = vmatpush3.bf16.msra.mxu0 %v3800_v59 }
 0x794   :  { %3485 = vmatprep.subr.bf16.mxu1 %v3801_v15  ;;  %3507 = vmatprep.subr.bf16.mxu0 %v3802_v11 }
 0x797   :  { %3486 = vmatpush3.bf16.msra.mxu1 %v3803_v25  ;;  %3508 = vmatpush3.bf16.msra.mxu0 %v3804_v8 }
 0x798   :  { %3487 = vmatprep.subr.bf16.mxu1 %v3805_v9  ;;  %3509 = vmatprep.subr.bf16.mxu0 %v3806_v30 }
 0x79b   :  { %3488 = vmatpush3.bf16.msra.mxu1 %v3807_v12  ;;  %3510 = vmatpush3.bf16.msra.mxu0 %v3808_v50 }
 0x83e   :  { %v2816_v19 = vpop.f32.mrf.mxu1  ;;  %v2859_v10 = vpop.f32.mrf.mxu0 }
 0x83f   :  { %v2817_v41 = vadd.f32 %v2816_v19, %v2605_v18  ;;  %v2860_v23 = vadd.f32 %v2859_v10, %v2613_v20 }
 0x840   :  { %v2818_v52 = vpop.f32.mrf.mxu1  ;;  %v2861_v4 = vpop.f32.mrf.mxu0 }
 0x841   :  { %v2819_v62 = vadd.f32 %v2818_v52, %v2609_v57  ;;  %v2862_v60 = vadd.f32 %v2861_v4, %v2617_v17  ;;  %v2868_v34 = vmax.f32 %v2817_v41, 0.0  ;;  %v2870_v26 = vmax.f32 %v2860_v23, 0.0 }
 0x842   :  { %v2820_v33 = vpop.f32.mrf.mxu1  ;;  %v2863_v35 = vpop.f32.mrf.mxu0 }
 0x843   :  { %v2821_v7 = vadd.f32 %v2820_v33, %v2605_v18  ;;  %v2864_v40 = vadd.f32 %v2863_v35, %v2613_v20  ;;  %v2869_v31 = vmax.f32 %v2819_v62, 0.0  ;;  %v2871_v21 = vmax.f32 %v2862_v60, 0.0  ;;  %v3422_v18 = vld [vmem:[%s4570_s12] ss:$0 sm:$0xff] }
 0x844   :  { %v2822_v28 = vpop.f32.mrf.mxu1  ;;  %v2865_v61 = vpop.f32.mrf.mxu0 }
 0x845   :  { %v2823_v29 = vadd.f32 %v2822_v28, %v2609_v57  ;;  %v2866_v3 = vadd.f32 %v2865_v61, %v2617_v17  ;;  %v2872_v5 = vmax.f32 %v2821_v7, 0.0  ;;  %v2874_v32 = vmax.f32 %v2864_v40, 0.0  ;;  %v3421_v57 = vld [vmem:[%s4569_s11] ss:$0 sm:$0xff] }
 0x847   :  { %v2873_v27 = vmax.f32 %v2823_v29, 0.0  ;;  %v2875_v56 = vmax.f32 %v2866_v3, 0.0  ;;  %v2876_v39 = vpack.c.bf16 %v2872_v5, %v2868_v34  ;;  %v2878_v0 = vpack.c.bf16 %v2874_v32, %v2870_v26 }
 0x849   :  { %v2877_v22 = vpack.c.bf16 %v2873_v27, %v2869_v31  ;;  %v2879_v38 = vpack.c.bf16 %v2875_v56, %v2871_v21 }
 0x84b   :  { %3175 = vmatprep.mubr.bf16.mxu1 %v2877_v22  ;;  %3216 = vmatprep.mubr.bf16.mxu0 %v2879_v38 }
 0x84c   :  { %3176 = vmatmul.mubr.bf16.vlgmr.msra.gmra.mxu1 %v2876_v39  ;;  %3217 = vmatmul.mubr.bf16.vlgmr.msra.gmra.mxu0 %v2878_v0 }
 0x90c   :  { %v3489_v42 = vpop.f32.mrf.mxu1  ;;  %v3511_v43 = vpop.f32.mrf.mxu0 }
 0x90e   :  { %v3490_v1 = vpop.f32.mrf.mxu1  ;;  %v3512_v48 = vpop.f32.mrf.mxu0 }
 0x90f   :  { %v3491_v24 = vadd.f32 %v3490_v1, %v3489_v42  ;;  %v3513_v13 = vadd.f32 %v3512_v48, %v3511_v43 }
 0x910   :  { %v3492_v2 = vpop.f32.mrf.mxu1  ;;  %v3514_v44 = vpop.f32.mrf.mxu0 }
 0x911   :  { %v3178_v45 = vadd.f32 %v3491_v24, %v3388_v63 }
 0x912   :  { %v3493_v46 = vpop.f32.mrf.mxu1  ;;  %v3515_v6 = vpop.f32.mrf.mxu0 }
 0x913   :  { %v3219_v47 = vadd.f32 %v3513_v13, %v3178_v45  ;;  %v3494_v49 = vadd.f32 %v3493_v46, %v3492_v2  ;;  %v3516_v53 = vadd.f32 %v3515_v6, %v3514_v44 }
 0x915   :  { %v3181_v51 = vadd.f32 %v3494_v49, %v3388_v63  ;;  %v3225_v54 = vadd.f32 %v3219_v47, %v4528_v36 }
 0x917   :  { %v3222_v55 = vadd.f32 %v3516_v53, %v3181_v51  ;;  %3229 = vadd.xlane.f32.xlu0 %v3225_v54 }
 0x919   :  { %v3226_v58 = vadd.f32 %v3222_v55, %v4530_v37 }
 0x91b   :  { %3231 = vadd.xlane.f32.xlu1 %v3226_v58 }
 0x9a0   :  { %v3230_v59 = vpop.xlane.xlu0 %3229 }
 0x9a1   :  { %v3233_v15 = vmul.f32 0.0078125, %v3230_v59 }
 0x9a3   :  { %v3235_v11 = vsub.f32 %v3225_v54, %v3233_v15 }
 0x9a4   :  { %v3232_v25 = vpop.xlane.xlu1 %3231 }
 0x9a5   :  { %v3234_v8 = vmul.f32 0.0078125, %v3232_v25  ;;  %v3237_v9 = vmul.f32 %v3235_v11, %v3235_v11 }
 0x9a7   :  { %v3236_v30 = vsub.f32 %v3226_v58, %v3234_v8  ;;  %3239 = vadd.xlane.f32.xlu0 %v3237_v9 }
 0x9a9   :  { %v3238_v12 = vmul.f32 %v3236_v30, %v3236_v30 }
 0x9ab   :  { %3241 = vadd.xlane.f32.xlu1 %v3238_v12 }
 0xa30   :  { %v3240_v50 = vpop.xlane.xlu0 %3239 }
 0xa31   :  { %v3243_v14 = vmul.f32 0.0078125, %v3240_v50 }
 0xa33   :  { %v3245_v16 = vadd.f32 1e-05, %v3243_v14 }
 0xa34   :  { %v3242_v19 = vpop.xlane.xlu1 %3241 }
 0xa35   :  { %3846 = vrsqrt.f32 %v3245_v16  ;;  %v3244_v36 = vmul.f32 0.0078125, %v3242_v19 }
 0xa37   :  { %v3246_v10 = vadd.f32 1e-05, %v3244_v36 }
 0xa39   :  { %3848 = vrsqrt.f32 %v3246_v10 }
 0xa42   :  { %v3847_v37 = vpop.eup %3846 }
 0xa43   :  { %v3249_v17 = vmul.f32 %v3847_v37, %v3235_v11 }
 0xa45   :  { %v3257_v20 = vmul.f32 %v3421_v57, %v3249_v17 }
 0xa46   :  { %v3849_v52 = vpop.eup %3848 }
 0xa47   :  { %v3250_v4 = vmul.f32 %v3849_v52, %v3236_v30  ;;  %v3265_v33 = vadd.f32 %v3422_v18, %v3257_v20 }
 0xa49   :  { %v3258_v35 = vmul.f32 %v3421_v57, %v3250_v4  ;;  %3267 = vst [vmem:[#allocation10] sm:$0xff] %v3265_v33 }
 0xa4b   :  { %v3266_v62 = vadd.f32 %v3422_v18, %v3258_v35 }
 0xa4d   :  { %3268 = vst [vmem:[#allocation10 + $0x8] sm:$0xff] %v3266_v62 }
 0xa4e   :  { %3942 = shalt.err (!%p3939_p10)
}
 0xa4f   :  { %s3977_s11 = smov 128   ;;  %s3978_s12 = smov 8  }
 0xa50   :  { %3280 = dma.vmem_to_hbm [thread:$0]  %s3275_s30, 256, %s4571_s13, [#allocation4], %s3977_s11, %s3977_s11, %s3978_s12  }
 0xa51   :  { %3957 = dma.done.wait [#allocation4], 256  }
 0xa52   :  { %3958 = vsyncadd [#allocation4], 4294967040 }
 0xa53   :  { %3284 = vsyncpa [#allocation3], 1 }
 0xa54   :  { %3285 = vsyncpa [#allocation6], 1 }
 0xa55   :  { %3286 = vsyncpa [#allocation9], 1 }
 0xa56   :  { %3287 = vsyncpa [#allocation4], 1 }

</bundles_post_ra>
